<compile_context>
chip_gen: v6e
topology: v6e:2x2x1
jax: 0.10.0
libtpu: 0.0.40
codegen_flags: <defaults>
</compile_context>

<pallas_src>
import math
from functools import partial

import jax
import jax.numpy as jnp
from jax import lax
from jax.experimental import pallas as pl
from jax.experimental.pallas import tpu as pltpu


def _round_up(x, m):
    return ((x + m - 1) // m) * m


# ----------------------------------------------------------------------------
# Generation-aware hardware configuration
# ----------------------------------------------------------------------------
_HW_CONFIG = None


def _tpu_config():
    """Trace-time hardware query: MXU-native row tile + VMEM budget."""
    global _HW_CONFIG
    if _HW_CONFIG is not None:
        return _HW_CONFIG
    kind = ""
    try:
        kind = jax.devices()[0].device_kind.lower()
    except Exception:
        pass
    vmem_cap = None
    try:
        vmem_cap = int(pltpu.get_tpu_info().vmem_capacity_bytes)
    except Exception:
        pass
    if vmem_cap is None:
        vmem_cap = (64 << 20) if "v7" in kind else (128 << 20)
    is_v5e = ("v5 lite" in kind) or ("v5e" in kind) or ("v5lite" in kind)
    # 4x128x128 MXU on v5e -> 128-row tiles; 2x256x256 on v6e/v7x -> 256.
    row_base = 128 if is_v5e else 256
    # Stay well clear of physical VMEM: ~48 MiB budget on v7x (64 MiB phys),
    # ~96 MiB on v5e/v6e (128 MiB phys).
    vmem_budget = min((vmem_cap * 3) // 4, 96 << 20)
    _HW_CONFIG = {"row_base": row_base, "vmem_budget": vmem_budget,
                  "vmem_capacity": vmem_cap}
    return _HW_CONFIG


# ----------------------------------------------------------------------------
# Pallas kernels
# ----------------------------------------------------------------------------
def _linear_kernel(*refs, k_tiles, gate, residual):
    """Tiled y = x @ W + b (f32 accumulate) with optional equivariant sigmoid
    gate on the frequency-0 block and optional fused residual add.

    Ref order: x, w, b, [wg, bg, rep], [res], out, [acc, [gacc]].
    """
    it = iter(refs)
    x_ref, w_ref, b_ref = next(it), next(it), next(it)
    if gate:
        wg_ref, bg_ref, rep_ref = next(it), next(it), next(it)
    if residual:
        res_ref = next(it)
    o_ref = next(it)
    if k_tiles > 1:
        acc_ref = next(it)
        if gate:
            gacc_ref = next(it)

    x = x_ref[...]
    part = jnp.dot(x, w_ref[...], preferred_element_type=jnp.float32)
    gpart = (jnp.dot(x, wg_ref[...], preferred_element_type=jnp.float32)
             if gate else None)

    def finalize(y_acc, g_acc):
        y = y_acc + b_ref[...].astype(jnp.float32)
        if gate:
            # sigmoid of the frequency-0 block gates every irrep component of
            # the same field.  The 0/1 replication matmul broadcasts the gate
            # across the tile without lane-shuffle copies and keeps the
            # multiplier identical on all components of a field (equivariance).
            g = jax.nn.sigmoid(g_acc + bg_ref[...])
            mult = jnp.dot(g, rep_ref[...], preferred_element_type=jnp.float32)
            y = y * mult
        if residual:
            y = y + res_ref[...].astype(jnp.float32)
        o_ref[...] = y.astype(o_ref.dtype)

    if k_tiles == 1:
        # Single K step: write straight through (no accumulator round trips).
        finalize(part, gpart)
    else:
        k = pl.program_id(2)

        @pl.when(k == 0)
        def _():
            acc_ref[...] = part
            if gate:
                gacc_ref[...] = gpart

        @pl.when(k > 0)
        def _():
            acc_ref[...] += part
            if gate:
                gacc_ref[...] += gpart

        @pl.when(k == pl.num_programs(2) - 1)
        def _():
            finalize(acc_ref[...], gacc_ref[...] if gate else None)


def equivariant_linear(x, w, b, *, tile_n, hw, gate=None, residual=None):
    """x: (Npad, Din) bf16, w: (Din, Dout) bf16, b: (1, Dout) f32.
    gate = (wg, bg, rep) enables the equivariant sigmoid gate; residual is an
    (Npad, Dout) slab fused into the epilogue.  Din/Dout are multiples of 128;
    Npad % tile_n == 0."""
    n, din = x.shape
    din_w, dout = w.shape
    assert din == din_w and n % tile_n == 0
    assert din % 128 == 0 and dout % 128 == 0

    gate_w = gate[0].shape[1] if gate is not None else 0
    budget = hw["vmem_budget"]

    def need(tk, td, ktiles, tn):
        bb = 2 * tn * tk * 2               # x (bf16, double-buffered)
        bb += 2 * tk * td * 2              # w
        bb += 2 * td * 4                   # b
        bb += 2 * tn * td * 2              # out
        if gate is not None:
            bb += 2 * tk * gate_w * 2 + 2 * gate_w * 4 + 2 * gate_w * td * 4
        if residual is not None:
            bb += 2 * tn * td * 2
        if ktiles > 1:
            bb += tn * td * 4              # f32 accumulator
            if gate is not None:
                bb += tn * gate_w * 4
        return bb + (2 << 20)              # compiler / intermediate headroom

    # Keep the whole K dimension resident whenever the (Din, tile_dout) weight
    # block fits the per-generation budget (no weight re-streaming per row tile
    # and no accumulator); otherwise tile K as well.
    dout_cands = []
    for c in (dout, 2048, 1024, 512, 256, 128):
        if c <= dout and dout % c == 0 and c not in dout_cands:
            dout_cands.append(c)
    tile_dout = tile_k = None
    for td in dout_cands:
        if need(din, td, 1, tile_n) <= budget:
            tile_dout, tile_k = td, din
            break
    if tile_dout is None:
        tile_dout = dout_cands[-1]
        for tk in (2048, 1024, 512, 256, 128):
            if tk <= din and din % tk == 0 and \
                    need(tk, tile_dout, din // tk, tile_n) <= budget:
                tile_k = tk
                break
        if tile_k is None:
            tile_k = 128
    k_tiles = din // tile_k

    # Megacore: expose >= 2 parallel blocks (v7x has 2 TensorCores per chip).
    if (n // tile_n) * (dout // tile_dout) < 2:
        half_d, half_n = tile_dout // 2, tile_n // 2
        if half_d >= 128 and half_d % 128 == 0 and dout % half_d == 0:
            tile_dout = half_d
        elif half_n >= 8 and half_n % 8 == 0 and n % half_n == 0:
            tile_n = half_n

    n_tiles, j_tiles = n // tile_n, dout // tile_dout
    vmem_limit = int(min(budget,
                         max(2 * need(tile_k, tile_dout, k_tiles, tile_n),
                             32 << 20)))

    w_map = lambda i, j, k: (k, j)
    if k_tiles > 2 and budget >= (64 << 20) and hasattr(pl, "Buffered"):
        # Streamed weight with exposed DMA: deepen buffering (v5e/v6e headroom).
        w_spec = pl.BlockSpec((tile_k, tile_dout), w_map,
                              pipeline_mode=pl.Buffered(3))
    else:
        w_spec = pl.BlockSpec((tile_k, tile_dout), w_map)

    in_specs = [pl.BlockSpec((tile_n, tile_k), lambda i, j, k: (i, k)),
                w_spec,
                pl.BlockSpec((1, tile_dout), lambda i, j, k: (0, j))]
    inputs = [x, w, b]
    if gate is not None:
        wg, bg, rep = gate
        in_specs += [pl.BlockSpec((tile_k, gate_w), lambda i, j, k: (k, 0)),
                     pl.BlockSpec((1, gate_w), lambda i, j, k: (0, 0)),
                     pl.BlockSpec((gate_w, tile_dout), lambda i, j, k: (0, j))]
        inputs += [wg, bg, rep]
    if residual is not None:
        in_specs.append(pl.BlockSpec((tile_n, tile_dout), lambda i, j, k: (i, j)))
        inputs.append(residual)

    scratch = []
    if k_tiles > 1:
        scratch.append(pltpu.VMEM((tile_n, tile_dout), jnp.float32))
        if gate is not None:
            scratch.append(pltpu.VMEM((tile_n, gate_w), jnp.float32))

    flops = 2 * n * din * dout
    trans = 0
    bytes_acc = 2 * (n * din + din * dout + n * dout) + 4 * dout
    if gate is not None:
        flops += 2 * n * din * gate_w + 2 * n * gate_w * dout
        trans = n * gate_w
        bytes_acc += 2 * din * gate_w + 4 * gate_w * (dout + 1)
    if residual is not None:
        bytes_acc += 2 * n * dout
    cost = pl.CostEstimate(flops=int(flops), transcendentals=int(trans),
                           bytes_accessed=int(bytes_acc))

    kern = partial(_linear_kernel, k_tiles=k_tiles,
                   gate=gate is not None, residual=residual is not None)
    return pl.pallas_call(
        kern,
        out_shape=jax.ShapeDtypeStruct((n, dout), x.dtype),
        grid=(n_tiles, j_tiles, k_tiles),
        in_specs=in_specs,
        out_specs=pl.BlockSpec((tile_n, tile_dout), lambda i, j, k: (i, j)),
        scratch_shapes=scratch,
        compiler_params=pltpu.CompilerParams(
            dimension_semantics=("parallel", "parallel", "arbitrary"),
            vmem_limit_bytes=vmem_limit),
        cost_estimate=cost,
    )(*inputs)


def _flash_attn_kernel(q_ref, k_ref, v_ref, o_ref, m_sc, l_sc, acc_sc):
    """Online-softmax attention for one (batch, head, q-tile); KV tiled on the
    innermost ('arbitrary') grid axis.  1/sqrt(d_k) is folded into Wq."""
    kv = pl.program_id(3)

    @pl.when(kv == 0)
    def _():
        m_sc[...] = jnp.full(m_sc.shape, -jnp.inf, dtype=m_sc.dtype)
        l_sc[...] = jnp.zeros(l_sc.shape, l_sc.dtype)
        acc_sc[...] = jnp.zeros(acc_sc.shape, acc_sc.dtype)

    # scores = q @ k^T (contraction over padded head dim; pads are zero)
    s = lax.dot_general(q_ref[...], k_ref[...],
                        dimension_numbers=(((1,), (1,)), ((), ())),
                        preferred_element_type=jnp.float32)
    m_prev = m_sc[...]
    m_new = jnp.maximum(m_prev, jnp.max(s, axis=-1, keepdims=True))
    alpha = jnp.exp(m_prev - m_new)
    p = jnp.exp(s - m_new)
    l_sc[...] = alpha * l_sc[...] + jnp.sum(p, axis=-1, keepdims=True)
    acc_sc[...] = alpha * acc_sc[...] + jnp.dot(
        p.astype(v_ref.dtype), v_ref[...], preferred_element_type=jnp.float32)
    m_sc[...] = m_new

    @pl.when(kv == pl.num_programs(3) - 1)
    def _():
        inv_l = pl.reciprocal(l_sc[...], approx=True)
        o_ref[...] = (acc_sc[...] * inv_l).astype(o_ref.dtype)


def flash_attention(qkv, *, batch, seq, num_heads, dh_p, hw):
    """qkv: (Npad, 3*H*dh_p) head-major fused projection output.
    Returns (batch*seq, H*dh_p) attention values in the same head-major layout
    (every output row is written -- no uninitialized padding rows)."""
    H = num_heads
    _, width = qkv.shape
    assert width == 3 * H * dh_p

    def seq_tile(cap):
        t = min(seq, cap) - (min(seq, cap) % 8)
        while t > 8 and seq % t:
            t -= 8
        return max(t, 8)

    tq = seq_tile(256 if hw["row_base"] >= 256 else 128)
    tkv = seq_tile(512)
    qb, kb = seq // tq, seq // tkv

    q_spec = pl.BlockSpec((tq, dh_p), lambda b, h, qi, ki: (b * qb + qi, h))
    k_spec = pl.BlockSpec((tkv, dh_p), lambda b, h, qi, ki: (b * kb + ki, H + h))
    v_spec = pl.BlockSpec((tkv, dh_p),
                          lambda b, h, qi, ki: (b * kb + ki, 2 * H + h))
    o_spec = pl.BlockSpec((tq, dh_p), lambda b, h, qi, ki: (b * qb + qi, h))

    need = (4 * tq * dh_p * 2 + 4 * tkv * dh_p * 2
            + tq * (dh_p + 2) * 4 + 6 * tq * tkv * 4 + (2 << 20))
    vmem_limit = int(min(hw["vmem_budget"], max(2 * need, 32 << 20)))

    cost = pl.CostEstimate(
        flops=int(4 * batch * H * seq * seq * dh_p),
        transcendentals=int(batch * H * seq * seq),
        bytes_accessed=int(2 * 4 * batch * H * seq * dh_p))

    return pl.pallas_call(
        _flash_attn_kernel,
        out_shape=jax.ShapeDtypeStruct((batch * seq, H * dh_p), qkv.dtype),
        grid=(batch, H, qb, kb),
        in_specs=[q_spec, k_spec, v_spec],
        out_specs=o_spec,
        scratch_shapes=[pltpu.VMEM((tq, 1), jnp.float32),
                        pltpu.VMEM((tq, 1), jnp.float32),
                        pltpu.VMEM((tq, dh_p), jnp.float32)],
        compiler_params=pltpu.CompilerParams(
            dimension_semantics=("parallel", "parallel", "parallel",
                                 "arbitrary"),
            vmem_limit_bytes=vmem_limit),
        cost_estimate=cost,
    )(qkv, qkv, qkv)


# ----------------------------------------------------------------------------
# Parameter construction (deterministic, SO(2)-equivariance constrained)
# ----------------------------------------------------------------------------
def _equivariant_blocks(key, c_in, c_out, L):
    """Logical dense (d*c_in, d*c_out) weight obeying the SO(2) irrep block
    structure (irrep-major layout on both sides) plus freq-0 bias."""
    d = 2 * L + 1
    keys = jax.random.split(key, 2 + L)
    k0, kb, kms = keys[0], keys[1], keys[2:]
    scale = 1.0 / math.sqrt(c_in * d)
    w = jnp.zeros((d * c_in, d * c_out), jnp.float32)
    w = w.at[:c_in, :c_out].set(scale * jax.random.normal(k0, (c_in, c_out)))
    for m in range(1, L + 1):
        ka, kb2 = jax.random.split(kms[m - 1])
        A = scale * jax.random.normal(ka, (c_in, c_out))
        Bm = scale * jax.random.normal(kb2, (c_in, c_out))
        rc, rs = 2 * m - 1, 2 * m
        w = w.at[rc * c_in:(rc + 1) * c_in, rc * c_out:(rc + 1) * c_out].set(A)
        w = w.at[rs * c_in:(rs + 1) * c_in, rs * c_out:(rs + 1) * c_out].set(A)
        w = w.at[rc * c_in:(rc + 1) * c_in, rs * c_out:(rs + 1) * c_out].set(Bm)
        w = w.at[rs * c_in:(rs + 1) * c_in, rc * c_out:(rc + 1) * c_out].set(-Bm)
    b = jnp.zeros((d * c_out,), jnp.float32)
    b = b.at[:c_out].set(0.1 * jax.random.normal(kb, (c_out,)))
    return w, b


def _pad_linear(w, b, din_pad, dout_pad):
    dw, dout = w.shape
    wp = jnp.zeros((din_pad, dout_pad), jnp.float32).at[:dw, :dout].set(w)
    bp = jnp.zeros((1, dout_pad), jnp.float32).at[0, :dout].set(b)
    return wp.astype(jnp.bfloat16), bp


def _gate_params(w, b, c, din_pad, dout_pad, d):
    """Freq-0 column block of W/b plus the 0/1 replication matrix mapping the
    per-field gate to every irrep component of that field."""
    c_pad = _round_up(c, 128)
    wg = jnp.zeros((din_pad, c_pad), jnp.float32).at[:w.shape[0], :c].set(
        w[:, :c])
    bg = jnp.zeros((1, c_pad), jnp.float32).at[0, :c].set(b[:c])
    rep = jnp.zeros((c_pad, dout_pad), jnp.float32)
    idx = jnp.arange(c)
    for r in range(d):
        rep = rep.at[idx, r * c + idx].set(1.0)
    return wg.astype(jnp.bfloat16), bg, rep


def init_params(key, c_in, model_dim, out_dim, num_heads, num_layers, L):
    d = 2 * L + 1
    hidden = 2 * model_dim
    hd = model_dim // num_heads
    dh = d * hd
    dh_p = _round_up(dh, 128)
    P_in = _round_up(d * c_in, 128)
    P_model = _round_up(d * model_dim, 128)
    P_hidden = _round_up(d * hidden, 128)
    P_out = _round_up(d * out_dim, 128)

    keys = jax.random.split(key, 3 + num_layers)
    params = {}
    w, b = _equivariant_blocks(keys[0], c_in, model_dim, L)
    params['in_w'], params['in_b'] = _pad_linear(w, b, P_in, P_model)

    layers = []
    for li in range(num_layers):
        lk = jax.random.split(keys[1 + li], 6)
        layer = {}

        # --- fused QKV projection, head-major padded output columns ----------
        wq, bq = _equivariant_blocks(lk[0], model_dim, model_dim, L)
        wk, bk = _equivariant_blocks(lk[1], model_dim, model_dim, L)
        wv, bv = _equivariant_blocks(lk[2], model_dim, model_dim, L)
        scale = 1.0 / math.sqrt(dh)            # fold 1/sqrt(d_k) into Wq, bq
        wq, bq = wq * scale, bq * scale
        Wqkv = jnp.zeros((P_model, 3 * num_heads * dh_p), jnp.float32)
        Bqkv = jnp.zeros((1, 3 * num_heads * dh_p), jnp.float32)
        for sec, (ws, bs) in enumerate(((wq, bq), (wk, bk), (wv, bv))):
            for h in range(num_heads):
                for r in range(d):
                    sc = r * model_dim + h * hd
                    tc = sec * num_heads * dh_p + h * dh_p + r * hd
                    Wqkv = Wqkv.at[:d * model_dim, tc:tc + hd].set(
                        ws[:, sc:sc + hd])
                    Bqkv = Bqkv.at[0, tc:tc + hd].set(bs[sc:sc + hd])
        layer['w_qkv'] = Wqkv.astype(jnp.bfloat16)
        layer['b_qkv'] = Bqkv

        # --- o_proj: rows permuted to consume the head-major attention output
        wo, bo = _equivariant_blocks(lk[3], model_dim, model_dim, L)
        Wo = jnp.zeros((num_heads * dh_p, P_model), jnp.float32)
        for h in range(num_heads):
            for r in range(d):
                sr = r * model_dim + h * hd
                tr = h * dh_p + r * hd
                Wo = Wo.at[tr:tr + hd, :d * model_dim].set(wo[sr:sr + hd, :])
        layer['w_o'] = Wo.astype(jnp.bfloat16)
        layer['b_o'] = jnp.zeros((1, P_model), jnp.float32).at[
            0, :d * model_dim].set(bo)

        # --- SO2MLP ----------------------------------------------------------
        w1, b1 = _equivariant_blocks(lk[4], model_dim, hidden, L)
        layer['w_m1'], layer['b_m1'] = _pad_linear(w1, b1, P_model, P_hidden)
        layer['wg_m1'], layer['bg_m1'], layer['rep_m1'] = _gate_params(
            w1, b1, hidden, P_model, P_hidden, d)
        w2, b2 = _equivariant_blocks(lk[5], hidden, model_dim, L)
        layer['w_m2'], layer['b_m2'] = _pad_linear(w2, b2, P_hidden, P_model)
        layers.append(layer)
    params['layers'] = layers

    w, b = _equivariant_blocks(keys[-2], model_dim, model_dim, L)
    params['out_w1'], params['out_b1'] = _pad_linear(w, b, P_model, P_model)
    params['out_wg1'], params['out_bg1'], params['out_rep1'] = _gate_params(
        w, b, model_dim, P_model, P_model, d)
    w, b = _equivariant_blocks(keys[-1], model_dim, out_dim, L)
    params['out_w2'], params['out_b2'] = _pad_linear(w, b, P_model, P_out)
    return params


# ----------------------------------------------------------------------------
# Full forward pass (layout plumbing in plain JAX, compute in Pallas kernels)
# ----------------------------------------------------------------------------
def so2_transformer_forward(x, params, *, L, c_in, model_dim, out_dim,
                            num_heads):
    d = 2 * L + 1
    B, S, feat = x.shape
    assert feat == d * c_in
    assert S % 8 == 0, "seq_len must be a multiple of 8"
    assert model_dim % num_heads == 0
    hw = _tpu_config()

    N = B * S
    H = num_heads
    hd = model_dim // H
    dh_p = _round_up(d * hd, 128)
    P_in = _round_up(d * c_in, 128)

    # Row tile: prefer the largest multiple-of-8 divisor of N (zero padding
    # rows); fall back to 128-row tiles with a small tail pad.
    tile_n = hw["row_base"]
    while tile_n > 8 and N % tile_n:
        tile_n -= 8
    if tile_n < 64 and N >= 256:
        tile_n = 128
    n_pad = _round_up(N, tile_n)

    x_p = jnp.zeros((n_pad, P_in), jnp.bfloat16)
    x_p = x_p.at[:N, :d * c_in].set(x.reshape(N, d * c_in).astype(jnp.bfloat16))

    # input_net: FieldDropout [identity in eval] + equivariant Linear
    h = equivariant_linear(x_p, params['in_w'], params['in_b'],
                           tile_n=tile_n, hw=hw)

    for layer in params['layers']:
        # ---- SO2MultiheadAttention ----
        qkv = equivariant_linear(h, layer['w_qkv'], layer['b_qkv'],
                                 tile_n=tile_n, hw=hw)
        vals = flash_attention(qkv, batch=B, seq=S, num_heads=H, dh_p=dh_p,
                               hw=hw)
        if n_pad != N:   # keep padding rows defined before they are re-read
            vals = jnp.zeros((n_pad, H * dh_p), vals.dtype).at[:N].set(vals)
        # o_proj with the residual add fused into its epilogue (dropout1 = id)
        h = equivariant_linear(vals, layer['w_o'], layer['b_o'],
                               tile_n=tile_n, hw=hw, residual=h)
        # ---- SO2MLP (hidden -> equivariant gate -> out), residual fused ----
        m = equivariant_linear(h, layer['w_m1'], layer['b_m1'],
                               tile_n=tile_n, hw=hw,
                               gate=(layer['wg_m1'], layer['bg_m1'],
                                     layer['rep_m1']))
        h = equivariant_linear(m, layer['w_m2'], layer['b_m2'],
                               tile_n=tile_n, hw=hw, residual=h)

    # output SO2MLP head
    o = equivariant_linear(h, params['out_w1'], params['out_b1'],
                           tile_n=tile_n, hw=hw,
                           gate=(params['out_wg1'], params['out_bg1'],
                                 params['out_rep1']))
    o = equivariant_linear(o, params['out_w2'], params['out_b2'],
                           tile_n=tile_n, hw=hw)
    # matches PyTorch: returned GeometricTensor has shape (B*S, out_dim * d)
    return o[:N, :d * out_dim].astype(jnp.float32)


# ----------------------------------------------------------------------------
if __name__ == "__main__":
    # small, consistent shapes
    L = 1                      # band limit  -> irrep dim d = 2L+1 = 3
    d = 2 * L + 1
    c_in = 4                   # input regular-rep fields -> in tensor dim 12
    model_dim = 8              # model fields             -> model tensor dim 24
    out_dim = 4                # output fields            -> out tensor dim 12
    num_heads = 2
    num_layers = 2
    batch, seq = 2, 8

    key = jax.random.PRNGKey(0)
    kx, kp = jax.random.split(key)
    x = jax.random.normal(kx, (batch, seq, d * c_in), dtype=jnp.float32)
    params = init_params(kp, c_in, model_dim, out_dim, num_heads, num_layers, L)

    fwd = jax.jit(partial(so2_transformer_forward, L=L, c_in=c_in,
                          model_dim=model_dim, out_dim=out_dim,
                          num_heads=num_heads))
    out = fwd(x, params)
    jax.block_until_ready(out)
    assert out.shape == (batch * seq, out_dim * d)
    assert bool(jnp.all(jnp.isfinite(out)))
    print("KERNEL_OK")
</pallas_src>

<mosaic_0001>
module attributes {stable_mosaic.version = 11 : i64} {
  func.func @_linear_kernel(%arg0: i32, %arg1: i32, %arg2: i32, %arg3: memref<8x128xbf16, #tpu.memory_space<vmem>>, %arg4: memref<128x128xbf16, #tpu.memory_space<vmem>>, %arg5: memref<1x128xf32, #tpu.memory_space<vmem>>, %arg6: memref<8x128xbf16, #tpu.memory_space<vmem>>) attributes {dimension_semantics = [#tpu.dimension_semantics<parallel>, #tpu.dimension_semantics<parallel>, #tpu.dimension_semantics<arbitrary>], iteration_bounds = array<i64: 2, 1, 1>, scalar_prefetch = 0 : i64, scratch_operands = 0 : i64, tpu.core_type = #tpu.core_type<tc>, window_params = [{transform_indices = @transform_0, window_bounds = array<i64: 8, 128>}, {transform_indices = @transform_1, window_bounds = array<i64: 128, 128>}, {transform_indices = @transform_2, window_bounds = array<i64: 1, 128>}, {transform_indices = @transform_3, window_bounds = array<i64: 8, 128>}]} {
    %c0 = arith.constant 0 : index
    %c0_0 = arith.constant 0 : index
    %0 = vector.load %arg3[%c0, %c0_0] : memref<8x128xbf16, #tpu.memory_space<vmem>>, vector<8x128xbf16>
    %c0_1 = arith.constant 0 : index
    %c0_2 = arith.constant 0 : index
    %1 = vector.load %arg4[%c0_1, %c0_2] : memref<128x128xbf16, #tpu.memory_space<vmem>>, vector<128x128xbf16>
    %cst = arith.constant dense<0.000000e+00> : vector<8x128xf32>
    %2 = tpu.matmul %0, %1, %cst {dimension_numbers = #tpu.dot_dimension_numbers<[1], [0], [0], [1], [0, 0, 1, 1], [], []>} : vector<8x128xbf16>, vector<128x128xbf16>, vector<8x128xf32> -> vector<8x128xf32>
    %c0_3 = arith.constant 0 : index
    %c0_4 = arith.constant 0 : index
    %3 = vector.load %arg5[%c0_3, %c0_4] : memref<1x128xf32, #tpu.memory_space<vmem>>, vector<1x128xf32>
    %4 = vector.broadcast %3 : vector<1x128xf32> to vector<8x128xf32>
    %5 = arith.addf %2, %4 : vector<8x128xf32>
    %6 = arith.truncf %5 : vector<8x128xf32> to vector<8x128xbf16>
    %c0_5 = arith.constant 0 : index
    %c0_6 = arith.constant 0 : index
    %7 = vector.load %arg6[%c0_5, %c0_6] : memref<8x128xbf16, #tpu.memory_space<vmem>>, vector<8x128xbf16>
    tpu.vector_store %arg6[%c0_5, %c0_6], %6 {strides = array<i32>} : memref<8x128xbf16, #tpu.memory_space<vmem>>, vector<8x128xbf16>,
    return
  }
  func.func @transform_0(%arg0: i32, %arg1: i32, %arg2: i32) -> (i32, i32) {
    %c0_i32 = arith.constant 0 : i32
    return %arg0, %arg2 : i32, i32
  }
  func.func @transform_1(%arg0: i32, %arg1: i32, %arg2: i32) -> (i32, i32) {
    %c0_i32 = arith.constant 0 : i32
    return %arg2, %arg1 : i32, i32
  }
  func.func @transform_2(%arg0: i32, %arg1: i32, %arg2: i32) -> (i32, i32) {
    %c0_i32 = arith.constant 0 : i32
    %c0_i32_0 = arith.constant 0 : i32
    return %c0_i32, %arg1 : i32, i32
  }
  func.func @transform_3(%arg0: i32, %arg1: i32, %arg2: i32) -> (i32, i32) {
    %c0_i32 = arith.constant 0 : i32
    return %arg0, %arg1 : i32, i32
  }
}

module attributes {stable_mosaic.version = 11 : i64} {
  func.func @_linear_kernel(%arg0: i32, %arg1: i32, %arg2: i32, %arg3: memref<16x128xbf16, #tpu.memory_space<vmem>>, %arg4: memref<128x384xbf16, #tpu.memory_space<vmem>>, %arg5: memref<1x384xf32, #tpu.memory_space<vmem>>, %arg6: memref<16x384xbf16, #tpu.memory_space<vmem>>) attributes {dimension_semantics = [#tpu.dimension_semantics<parallel>, #tpu.dimension_semantics<parallel>, #tpu.dimension_semantics<arbitrary>], iteration_bounds = array<i64: 1, 2, 1>, scalar_prefetch = 0 : i64, scratch_operands = 0 : i64, tpu.core_type = #tpu.core_type<tc>, window_params = [{transform_indices = @transform_0, window_bounds = array<i64: 16, 128>}, {transform_indices = @transform_1, window_bounds = array<i64: 128, 384>}, {transform_indices = @transform_2, window_bounds = array<i64: 1, 384>}, {transform_indices = @transform_3, window_bounds = array<i64: 16, 384>}]} {
    %c0 = arith.constant 0 : index
    %c0_0 = arith.constant 0 : index
    %0 = vector.load %arg3[%c0, %c0_0] : memref<16x128xbf16, #tpu.memory_space<vmem>>, vector<16x128xbf16>
    %c0_1 = arith.constant 0 : index
    %c0_2 = arith.constant 0 : index
    %1 = vector.load %arg4[%c0_1, %c0_2] : memref<128x384xbf16, #tpu.memory_space<vmem>>, vector<128x384xbf16>
    %cst = arith.constant dense<0.000000e+00> : vector<16x384xf32>
    %2 = tpu.matmul %0, %1, %cst {dimension_numbers = #tpu.dot_dimension_numbers<[1], [0], [0], [1], [0, 0, 1, 1], [], []>} : vector<16x128xbf16>, vector<128x384xbf16>, vector<16x384xf32> -> vector<16x384xf32>
    %c0_3 = arith.constant 0 : index
    %c0_4 = arith.constant 0 : index
    %3 = vector.load %arg5[%c0_3, %c0_4] : memref<1x384xf32, #tpu.memory_space<vmem>>, vector<1x384xf32>
    %4 = vector.broadcast %3 : vector<1x384xf32> to vector<16x384xf32>
    %5 = arith.addf %2, %4 : vector<16x384xf32>
    %6 = arith.truncf %5 : vector<16x384xf32> to vector<16x384xbf16>
    %c0_5 = arith.constant 0 : index
    %c0_6 = arith.constant 0 : index
    %7 = vector.load %arg6[%c0_5, %c0_6] : memref<16x384xbf16, #tpu.memory_space<vmem>>, vector<16x384xbf16>
    tpu.vector_store %arg6[%c0_5, %c0_6], %6 {strides = array<i32>} : memref<16x384xbf16, #tpu.memory_space<vmem>>, vector<16x384xbf16>,
    return
  }
  func.func @transform_0(%arg0: i32, %arg1: i32, %arg2: i32) -> (i32, i32) {
    %c0_i32 = arith.constant 0 : i32
    return %arg0, %arg2 : i32, i32
  }
  func.func @transform_1(%arg0: i32, %arg1: i32, %arg2: i32) -> (i32, i32) {
    %c0_i32 = arith.constant 0 : i32
    return %arg2, %arg1 : i32, i32
  }
  func.func @transform_2(%arg0: i32, %arg1: i32, %arg2: i32) -> (i32, i32) {
    %c0_i32 = arith.constant 0 : i32
    %c0_i32_0 = arith.constant 0 : i32
    return %c0_i32, %arg1 : i32, i32
  }
  func.func @transform_3(%arg0: i32, %arg1: i32, %arg2: i32) -> (i32, i32) {
    %c0_i32 = arith.constant 0 : i32
    return %arg0, %arg1 : i32, i32
  }
}

module attributes {stable_mosaic.version = 11 : i64} {
  func.func @_linear_kernel(%arg0: i32, %arg1: i32, %arg2: i32, %arg3: memref<8x256xbf16, #tpu.memory_space<vmem>>, %arg4: memref<256x128xbf16, #tpu.memory_space<vmem>>, %arg5: memref<1x128xf32, #tpu.memory_space<vmem>>, %arg6: memref<8x128xbf16, #tpu.memory_space<vmem>>, %arg7: memref<8x128xbf16, #tpu.memory_space<vmem>>) attributes {dimension_semantics = [#tpu.dimension_semantics<parallel>, #tpu.dimension_semantics<parallel>, #tpu.dimension_semantics<arbitrary>], iteration_bounds = array<i64: 2, 1, 1>, scalar_prefetch = 0 : i64, scratch_operands = 0 : i64, tpu.core_type = #tpu.core_type<tc>, window_params = [{transform_indices = @transform_0, window_bounds = array<i64: 8, 256>}, {transform_indices = @transform_1, window_bounds = array<i64: 256, 128>}, {transform_indices = @transform_2, window_bounds = array<i64: 1, 128>}, {transform_indices = @transform_3, window_bounds = array<i64: 8, 128>}, {transform_indices = @transform_4, window_bounds = array<i64: 8, 128>}]} {
    %c0 = arith.constant 0 : index
    %c0_0 = arith.constant 0 : index
    %0 = vector.load %arg3[%c0, %c0_0] : memref<8x256xbf16, #tpu.memory_space<vmem>>, vector<8x256xbf16>
    %c0_1 = arith.constant 0 : index
    %c0_2 = arith.constant 0 : index
    %1 = vector.load %arg4[%c0_1, %c0_2] : memref<256x128xbf16, #tpu.memory_space<vmem>>, vector<256x128xbf16>
    %cst = arith.constant dense<0.000000e+00> : vector<8x128xf32>
    %2 = tpu.matmul %0, %1, %cst {dimension_numbers = #tpu.dot_dimension_numbers<[1], [0], [0], [1], [0, 0, 1, 1], [], []>} : vector<8x256xbf16>, vector<256x128xbf16>, vector<8x128xf32> -> vector<8x128xf32>
    %c0_3 = arith.constant 0 : index
    %c0_4 = arith.constant 0 : index
    %3 = vector.load %arg5[%c0_3, %c0_4] : memref<1x128xf32, #tpu.memory_space<vmem>>, vector<1x128xf32>
    %4 = vector.broadcast %3 : vector<1x128xf32> to vector<8x128xf32>
    %5 = arith.addf %2, %4 : vector<8x128xf32>
    %c0_5 = arith.constant 0 : index
    %c0_6 = arith.constant 0 : index
    %6 = vector.load %arg6[%c0_5, %c0_6] : memref<8x128xbf16, #tpu.memory_space<vmem>>, vector<8x128xbf16>
    %7 = arith.extf %6 : vector<8x128xbf16> to vector<8x128xf32>
    %8 = arith.addf %5, %7 : vector<8x128xf32>
    %9 = arith.truncf %8 : vector<8x128xf32> to vector<8x128xbf16>
    %c0_7 = arith.constant 0 : index
    %c0_8 = arith.constant 0 : index
    %10 = vector.load %arg7[%c0_7, %c0_8] : memref<8x128xbf16, #tpu.memory_space<vmem>>, vector<8x128xbf16>
    tpu.vector_store %arg7[%c0_7, %c0_8], %9 {strides = array<i32>} : memref<8x128xbf16, #tpu.memory_space<vmem>>, vector<8x128xbf16>,
    return
  }
  func.func @transform_0(%arg0: i32, %arg1: i32, %arg2: i32) -> (i32, i32) {
    %c0_i32 = arith.constant 0 : i32
    return %arg0, %arg2 : i32, i32
  }
  func.func @transform_1(%arg0: i32, %arg1: i32, %arg2: i32) -> (i32, i32) {
    %c0_i32 = arith.constant 0 : i32
    return %arg2, %arg1 : i32, i32
  }
  func.func @transform_2(%arg0: i32, %arg1: i32, %arg2: i32) -> (i32, i32) {
    %c0_i32 = arith.constant 0 : i32
    %c0_i32_0 = arith.constant 0 : i32
    return %c0_i32, %arg1 : i32, i32
  }
  func.func @transform_3(%arg0: i32, %arg1: i32, %arg2: i32) -> (i32, i32) {
    %c0_i32 = arith.constant 0 : i32
    return %arg0, %arg1 : i32, i32
  }
  func.func @transform_4(%arg0: i32, %arg1: i32, %arg2: i32) -> (i32, i32) {
    %c0_i32 = arith.constant 0 : i32
    return %arg0, %arg1 : i32, i32
  }
}

module attributes {stable_mosaic.version = 11 : i64} {
  func.func @_flash_attn_kernel(%arg0: i32, %arg1: i32, %arg2: i32, %arg3: i32, %arg4: memref<8x128xbf16, #tpu.memory_space<vmem>>, %arg5: memref<8x128xbf16, #tpu.memory_space<vmem>>, %arg6: memref<8x128xbf16, #tpu.memory_space<vmem>>, %arg7: memref<8x128xbf16, #tpu.memory_space<vmem>>, %arg8: memref<8x1xf32, #tpu.memory_space<vmem>>, %arg9: memref<8x1xf32, #tpu.memory_space<vmem>>, %arg10: memref<8x128xf32, #tpu.memory_space<vmem>>) attributes {dimension_semantics = [#tpu.dimension_semantics<parallel>, #tpu.dimension_semantics<parallel>, #tpu.dimension_semantics<parallel>, #tpu.dimension_semantics<arbitrary>], iteration_bounds = array<i64: 2, 2, 1, 1>, scalar_prefetch = 0 : i64, scratch_operands = 3 : i64, tpu.core_type = #tpu.core_type<tc>, window_params = [{transform_indices = @transform_0, window_bounds = array<i64: 8, 128>}, {transform_indices = @transform_1, window_bounds = array<i64: 8, 128>}, {transform_indices = @transform_2, window_bounds = array<i64: 8, 128>}, {transform_indices = @transform_3, window_bounds = array<i64: 8, 128>}]} {
    %c0_i32 = arith.constant 0 : i32
    %0 = arith.cmpi eq, %arg3, %c0_i32 : i32
    %1 = arith.extui %0 : i1 to i32
    %c0_i32_0 = arith.constant 0 : i32
    %2 = arith.cmpi ne, %1, %c0_i32_0 : i32
    scf.if %2 {
      %cst_23 = arith.constant 0xFF800000 : f32
      %33 = vector.broadcast %cst_23 : f32 to vector<8x1xf32>
      %c0_24 = arith.constant 0 : index
      %c0_25 = arith.constant 0 : index
      %34 = vector.load %arg8[%c0_24, %c0_25] : memref<8x1xf32, #tpu.memory_space<vmem>>, vector<8x1xf32>
      tpu.vector_store %arg8[%c0_24, %c0_25], %33 {strides = array<i32>} : memref<8x1xf32, #tpu.memory_space<vmem>>, vector<8x1xf32>,
      %cst_26 = arith.constant 0.000000e+00 : f32
      %35 = vector.broadcast %cst_26 : f32 to vector<8x1xf32>
      %c0_27 = arith.constant 0 : index
      %c0_28 = arith.constant 0 : index
      %36 = vector.load %arg9[%c0_27, %c0_28] : memref<8x1xf32, #tpu.memory_space<vmem>>, vector<8x1xf32>
      tpu.vector_store %arg9[%c0_27, %c0_28], %35 {strides = array<i32>} : memref<8x1xf32, #tpu.memory_space<vmem>>, vector<8x1xf32>,
      %cst_29 = arith.constant 0.000000e+00 : f32
      %37 = vector.broadcast %cst_29 : f32 to vector<8x128xf32>
      %c0_30 = arith.constant 0 : index
      %c0_31 = arith.constant 0 : index
      %38 = vector.load %arg10[%c0_30, %c0_31] : memref<8x128xf32, #tpu.memory_space<vmem>>, vector<8x128xf32>
      tpu.vector_store %arg10[%c0_30, %c0_31], %37 {strides = array<i32>} : memref<8x128xf32, #tpu.memory_space<vmem>>, vector<8x128xf32>,
    } else {
    }
    %c0 = arith.constant 0 : index
    %c0_1 = arith.constant 0 : index
    %3 = vector.load %arg4[%c0, %c0_1] : memref<8x128xbf16, #tpu.memory_space<vmem>>, vector<8x128xbf16>
    %c0_2 = arith.constant 0 : index
    %c0_3 = arith.constant 0 : index
    %4 = vector.load %arg5[%c0_2, %c0_3] : memref<8x128xbf16, #tpu.memory_space<vmem>>, vector<8x128xbf16>
    %cst = arith.constant dense<0.000000e+00> : vector<8x8xf32>
    %5 = tpu.matmul %3, %4, %cst {dimension_numbers = #tpu.dot_dimension_numbers<[1], [1], [0], [0], [0, 0, 1, 0], [], []>} : vector<8x128xbf16>, vector<8x128xbf16>, vector<8x8xf32> -> vector<8x8xf32>
    %c0_4 = arith.constant 0 : index
    %c0_5 = arith.constant 0 : index
    %6 = vector.load %arg8[%c0_4, %c0_5] : memref<8x1xf32, #tpu.memory_space<vmem>>, vector<8x1xf32>
    %cst_6 = arith.constant dense<0xFF800000> : vector<8xf32>
    %7 = vector.multi_reduction <maximumf>, %5, %cst_6 [1] : vector<8x8xf32> to vector<8xf32>
    %8 = vector.shape_cast %7 : vector<8xf32> to vector<8x1xf32>
    %9 = arith.maximumf %6, %8 : vector<8x1xf32>
    %10 = arith.subf %6, %9 : vector<8x1xf32>
    %11 = math.exp %10 : vector<8x1xf32>
    %12 = vector.broadcast %9 : vector<8x1xf32> to vector<8x8xf32>
    %13 = arith.subf %5, %12 : vector<8x8xf32>
    %14 = math.exp %13 : vector<8x8xf32>
    %c0_7 = arith.constant 0 : index
    %c0_8 = arith.constant 0 : index
    %15 = vector.load %arg9[%c0_7, %c0_8] : memref<8x1xf32, #tpu.memory_space<vmem>>, vector<8x1xf32>
    %16 = arith.mulf %11, %15 : vector<8x1xf32>
    %cst_9 = arith.constant dense<0.000000e+00> : vector<8xf32>
    %17 = vector.multi_reduction <add>, %14, %cst_9 [1] : vector<8x8xf32> to vector<8xf32>
    %18 = vector.shape_cast %17 : vector<8xf32> to vector<8x1xf32>
    %19 = arith.addf %16, %18 : vector<8x1xf32>
    %c0_10 = arith.constant 0 : index
    %c0_11 = arith.constant 0 : index
    %20 = vector.load %arg9[%c0_10, %c0_11] : memref<8x1xf32, #tpu.memory_space<vmem>>, vector<8x1xf32>
    tpu.vector_store %arg9[%c0_10, %c0_11], %19 {strides = array<i32>} : memref<8x1xf32, #tpu.memory_space<vmem>>, vector<8x1xf32>,
    %c0_12 = arith.constant 0 : index
    %c0_13 = arith.constant 0 : index
    %21 = vector.load %arg10[%c0_12, %c0_13] : memref<8x128xf32, #tpu.memory_space<vmem>>, vector<8x128xf32>
    %22 = vector.broadcast %11 : vector<8x1xf32> to vector<8x128xf32>
    %23 = arith.mulf %22, %21 : vector<8x128xf32>
    %24 = arith.truncf %14 : vector<8x8xf32> to vector<8x8xbf16>
    %c0_14 = arith.constant 0 : index
    %c0_15 = arith.constant 0 : index
    %25 = vector.load %arg6[%c0_14, %c0_15] : memref<8x128xbf16, #tpu.memory_space<vmem>>, vector<8x128xbf16>
    %cst_16 = arith.constant dense<0.000000e+00> : vector<8x128xf32>
    %26 = tpu.matmul %24, %25, %cst_16 {dimension_numbers = #tpu.dot_dimension_numbers<[1], [0], [0], [1], [0, 0, 1, 1], [], []>} : vector<8x8xbf16>, vector<8x128xbf16>, vector<8x128xf32> -> vector<8x128xf32>
    %27 = arith.addf %23, %26 : vector<8x128xf32>
    %c0_17 = arith.constant 0 : index
    %c0_18 = arith.constant 0 : index
    %28 = vector.load %arg10[%c0_17, %c0_18] : memref<8x128xf32, #tpu.memory_space<vmem>>, vector<8x128xf32>
    tpu.vector_store %arg10[%c0_17, %c0_18], %27 {strides = array<i32>} : memref<8x128xf32, #tpu.memory_space<vmem>>, vector<8x128xf32>,
    %c0_19 = arith.constant 0 : index
    %c0_20 = arith.constant 0 : index
    %29 = vector.load %arg8[%c0_19, %c0_20] : memref<8x1xf32, #tpu.memory_space<vmem>>, vector<8x1xf32>
    tpu.vector_store %arg8[%c0_19, %c0_20], %9 {strides = array<i32>} : memref<8x1xf32, #tpu.memory_space<vmem>>, vector<8x1xf32>,
    %c0_i32_21 = arith.constant 0 : i32
    %30 = arith.cmpi eq, %arg3, %c0_i32_21 : i32
    %31 = arith.extui %30 : i1 to i32
    %c0_i32_22 = arith.constant 0 : i32
    %32 = arith.cmpi ne, %31, %c0_i32_22 : i32
    scf.if %32 {
      %c0_23 = arith.constant 0 : index
      %c0_24 = arith.constant 0 : index
      %33 = vector.load %arg9[%c0_23, %c0_24] : memref<8x1xf32, #tpu.memory_space<vmem>>, vector<8x1xf32>
      %34 = tpu.reciprocal %33 {approx = true} : vector<8x1xf32> -> vector<8x1xf32>
      %c0_25 = arith.constant 0 : index
      %c0_26 = arith.constant 0 : index
      %35 = vector.load %arg10[%c0_25, %c0_26] : memref<8x128xf32, #tpu.memory_space<vmem>>, vector<8x128xf32>
      %36 = vector.broadcast %34 : vector<8x1xf32> to vector<8x128xf32>
      %37 = arith.mulf %35, %36 : vector<8x128xf32>
      %38 = arith.truncf %37 : vector<8x128xf32> to vector<8x128xbf16>
      %c0_27 = arith.constant 0 : index
      %c0_28 = arith.constant 0 : index
      %39 = vector.load %arg7[%c0_27, %c0_28] : memref<8x128xbf16, #tpu.memory_space<vmem>>, vector<8x128xbf16>
      tpu.vector_store %arg7[%c0_27, %c0_28], %38 {strides = array<i32>} : memref<8x128xbf16, #tpu.memory_space<vmem>>, vector<8x128xbf16>,
    } else {
    }
    return
  }
  func.func @transform_0(%arg0: i32, %arg1: i32, %arg2: i32, %arg3: i32) -> (i32, i32) {
    %c1_i32 = arith.constant 1 : i32
    %0 = arith.muli %arg0, %c1_i32 : i32
    %1 = arith.addi %0, %arg2 : i32
    %c0_i32 = arith.constant 0 : i32
    return %1, %arg1 : i32, i32
  }
  func.func @transform_1(%arg0: i32, %arg1: i32, %arg2: i32, %arg3: i32) -> (i32, i32) {
    %c1_i32 = arith.constant 1 : i32
    %0 = arith.muli %arg0, %c1_i32 : i32
    %1 = arith.addi %0, %arg3 : i32
    %c2_i32 = arith.constant 2 : i32
    %2 = arith.addi %c2_i32, %arg1 : i32
    %c0_i32 = arith.constant 0 : i32
    return %1, %2 : i32, i32
  }
  func.func @transform_2(%arg0: i32, %arg1: i32, %arg2: i32, %arg3: i32) -> (i32, i32) {
    %c1_i32 = arith.constant 1 : i32
    %0 = arith.muli %arg0, %c1_i32 : i32
    %1 = arith.addi %0, %arg3 : i32
    %c4_i32 = arith.constant 4 : i32
    %2 = arith.addi %c4_i32, %arg1 : i32
    %c0_i32 = arith.constant 0 : i32
    return %1, %2 : i32, i32
  }
  func.func @transform_3(%arg0: i32, %arg1: i32, %arg2: i32, %arg3: i32) -> (i32, i32) {
    %c1_i32 = arith.constant 1 : i32
    %0 = arith.muli %arg0, %c1_i32 : i32
    %1 = arith.addi %0, %arg2 : i32
    %c0_i32 = arith.constant 0 : i32
    return %1, %arg1 : i32, i32
  }
}

module attributes {stable_mosaic.version = 11 : i64} {
  func.func @_linear_kernel(%arg0: i32, %arg1: i32, %arg2: i32, %arg3: memref<8x128xbf16, #tpu.memory_space<vmem>>, %arg4: memref<128x128xbf16, #tpu.memory_space<vmem>>, %arg5: memref<1x128xf32, #tpu.memory_space<vmem>>, %arg6: memref<8x128xbf16, #tpu.memory_space<vmem>>, %arg7: memref<8x128xbf16, #tpu.memory_space<vmem>>) attributes {dimension_semantics = [#tpu.dimension_semantics<parallel>, #tpu.dimension_semantics<parallel>, #tpu.dimension_semantics<arbitrary>], iteration_bounds = array<i64: 2, 1, 1>, scalar_prefetch = 0 : i64, scratch_operands = 0 : i64, tpu.core_type = #tpu.core_type<tc>, window_params = [{transform_indices = @transform_0, window_bounds = array<i64: 8, 128>}, {transform_indices = @transform_1, window_bounds = array<i64: 128, 128>}, {transform_indices = @transform_2, window_bounds = array<i64: 1, 128>}, {transform_indices = @transform_3, window_bounds = array<i64: 8, 128>}, {transform_indices = @transform_4, window_bounds = array<i64: 8, 128>}]} {
    %c0 = arith.constant 0 : index
    %c0_0 = arith.constant 0 : index
    %0 = vector.load %arg3[%c0, %c0_0] : memref<8x128xbf16, #tpu.memory_space<vmem>>, vector<8x128xbf16>
    %c0_1 = arith.constant 0 : index
    %c0_2 = arith.constant 0 : index
    %1 = vector.load %arg4[%c0_1, %c0_2] : memref<128x128xbf16, #tpu.memory_space<vmem>>, vector<128x128xbf16>
    %cst = arith.constant dense<0.000000e+00> : vector<8x128xf32>
    %2 = tpu.matmul %0, %1, %cst {dimension_numbers = #tpu.dot_dimension_numbers<[1], [0], [0], [1], [0, 0, 1, 1], [], []>} : vector<8x128xbf16>, vector<128x128xbf16>, vector<8x128xf32> -> vector<8x128xf32>
    %c0_3 = arith.constant 0 : index
    %c0_4 = arith.constant 0 : index
    %3 = vector.load %arg5[%c0_3, %c0_4] : memref<1x128xf32, #tpu.memory_space<vmem>>, vector<1x128xf32>
    %4 = vector.broadcast %3 : vector<1x128xf32> to vector<8x128xf32>
    %5 = arith.addf %2, %4 : vector<8x128xf32>
    %c0_5 = arith.constant 0 : index
    %c0_6 = arith.constant 0 : index
    %6 = vector.load %arg6[%c0_5, %c0_6] : memref<8x128xbf16, #tpu.memory_space<vmem>>, vector<8x128xbf16>
    %7 = arith.extf %6 : vector<8x128xbf16> to vector<8x128xf32>
    %8 = arith.addf %5, %7 : vector<8x128xf32>
    %9 = arith.truncf %8 : vector<8x128xf32> to vector<8x128xbf16>
    %c0_7 = arith.constant 0 : index
    %c0_8 = arith.constant 0 : index
    %10 = vector.load %arg7[%c0_7, %c0_8] : memref<8x128xbf16, #tpu.memory_space<vmem>>, vector<8x128xbf16>
    tpu.vector_store %arg7[%c0_7, %c0_8], %9 {strides = array<i32>} : memref<8x128xbf16, #tpu.memory_space<vmem>>, vector<8x128xbf16>,
    return
  }
  func.func @transform_0(%arg0: i32, %arg1: i32, %arg2: i32) -> (i32, i32) {
    %c0_i32 = arith.constant 0 : i32
    return %arg0, %arg2 : i32, i32
  }
  func.func @transform_1(%arg0: i32, %arg1: i32, %arg2: i32) -> (i32, i32) {
    %c0_i32 = arith.constant 0 : i32
    return %arg2, %arg1 : i32, i32
  }
  func.func @transform_2(%arg0: i32, %arg1: i32, %arg2: i32) -> (i32, i32) {
    %c0_i32 = arith.constant 0 : i32
    %c0_i32_0 = arith.constant 0 : i32
    return %c0_i32, %arg1 : i32, i32
  }
  func.func @transform_3(%arg0: i32, %arg1: i32, %arg2: i32) -> (i32, i32) {
    %c0_i32 = arith.constant 0 : i32
    return %arg0, %arg1 : i32, i32
  }
  func.func @transform_4(%arg0: i32, %arg1: i32, %arg2: i32) -> (i32, i32) {
    %c0_i32 = arith.constant 0 : i32
    return %arg0, %arg1 : i32, i32
  }
}

module attributes {stable_mosaic.version = 11 : i64} {
  func.func @_linear_kernel(%arg0: i32, %arg1: i32, %arg2: i32, %arg3: memref<16x128xbf16, #tpu.memory_space<vmem>>, %arg4: memref<128x384xbf16, #tpu.memory_space<vmem>>, %arg5: memref<1x384xf32, #tpu.memory_space<vmem>>, %arg6: memref<16x384xbf16, #tpu.memory_space<vmem>>) attributes {dimension_semantics = [#tpu.dimension_semantics<parallel>, #tpu.dimension_semantics<parallel>, #tpu.dimension_semantics<arbitrary>], iteration_bounds = array<i64: 1, 2, 1>, scalar_prefetch = 0 : i64, scratch_operands = 0 : i64, tpu.core_type = #tpu.core_type<tc>, window_params = [{transform_indices = @transform_0, window_bounds = array<i64: 16, 128>}, {transform_indices = @transform_1, window_bounds = array<i64: 128, 384>}, {transform_indices = @transform_2, window_bounds = array<i64: 1, 384>}, {transform_indices = @transform_3, window_bounds = array<i64: 16, 384>}]} {
    %c0 = arith.constant 0 : index
    %c0_0 = arith.constant 0 : index
    %0 = vector.load %arg3[%c0, %c0_0] : memref<16x128xbf16, #tpu.memory_space<vmem>>, vector<16x128xbf16>
    %c0_1 = arith.constant 0 : index
    %c0_2 = arith.constant 0 : index
    %1 = vector.load %arg4[%c0_1, %c0_2] : memref<128x384xbf16, #tpu.memory_space<vmem>>, vector<128x384xbf16>
    %cst = arith.constant dense<0.000000e+00> : vector<16x384xf32>
    %2 = tpu.matmul %0, %1, %cst {dimension_numbers = #tpu.dot_dimension_numbers<[1], [0], [0], [1], [0, 0, 1, 1], [], []>} : vector<16x128xbf16>, vector<128x384xbf16>, vector<16x384xf32> -> vector<16x384xf32>
    %c0_3 = arith.constant 0 : index
    %c0_4 = arith.constant 0 : index
    %3 = vector.load %arg5[%c0_3, %c0_4] : memref<1x384xf32, #tpu.memory_space<vmem>>, vector<1x384xf32>
    %4 = vector.broadcast %3 : vector<1x384xf32> to vector<16x384xf32>
    %5 = arith.addf %2, %4 : vector<16x384xf32>
    %6 = arith.truncf %5 : vector<16x384xf32> to vector<16x384xbf16>
    %c0_5 = arith.constant 0 : index
    %c0_6 = arith.constant 0 : index
    %7 = vector.load %arg6[%c0_5, %c0_6] : memref<16x384xbf16, #tpu.memory_space<vmem>>, vector<16x384xbf16>
    tpu.vector_store %arg6[%c0_5, %c0_6], %6 {strides = array<i32>} : memref<16x384xbf16, #tpu.memory_space<vmem>>, vector<16x384xbf16>,
    return
  }
  func.func @transform_0(%arg0: i32, %arg1: i32, %arg2: i32) -> (i32, i32) {
    %c0_i32 = arith.constant 0 : i32
    return %arg0, %arg2 : i32, i32
  }
  func.func @transform_1(%arg0: i32, %arg1: i32, %arg2: i32) -> (i32, i32) {
    %c0_i32 = arith.constant 0 : i32
    return %arg2, %arg1 : i32, i32
  }
  func.func @transform_2(%arg0: i32, %arg1: i32, %arg2: i32) -> (i32, i32) {
    %c0_i32 = arith.constant 0 : i32
    %c0_i32_0 = arith.constant 0 : i32
    return %c0_i32, %arg1 : i32, i32
  }
  func.func @transform_3(%arg0: i32, %arg1: i32, %arg2: i32) -> (i32, i32) {
    %c0_i32 = arith.constant 0 : i32
    return %arg0, %arg1 : i32, i32
  }
}

module attributes {stable_mosaic.version = 11 : i64} {
  func.func @_linear_kernel(%arg0: i32, %arg1: i32, %arg2: i32, %arg3: memref<8x128xbf16, #tpu.memory_space<vmem>>, %arg4: memref<128x128xbf16, #tpu.memory_space<vmem>>, %arg5: memref<1x128xf32, #tpu.memory_space<vmem>>, %arg6: memref<8x128xbf16, #tpu.memory_space<vmem>>) attributes {dimension_semantics = [#tpu.dimension_semantics<parallel>, #tpu.dimension_semantics<parallel>, #tpu.dimension_semantics<arbitrary>], iteration_bounds = array<i64: 2, 1, 1>, scalar_prefetch = 0 : i64, scratch_operands = 0 : i64, tpu.core_type = #tpu.core_type<tc>, window_params = [{transform_indices = @transform_0, window_bounds = array<i64: 8, 128>}, {transform_indices = @transform_1, window_bounds = array<i64: 128, 128>}, {transform_indices = @transform_2, window_bounds = array<i64: 1, 128>}, {transform_indices = @transform_3, window_bounds = array<i64: 8, 128>}]} {
    %c0 = arith.constant 0 : index
    %c0_0 = arith.constant 0 : index
    %0 = vector.load %arg3[%c0, %c0_0] : memref<8x128xbf16, #tpu.memory_space<vmem>>, vector<8x128xbf16>
    %c0_1 = arith.constant 0 : index
    %c0_2 = arith.constant 0 : index
    %1 = vector.load %arg4[%c0_1, %c0_2] : memref<128x128xbf16, #tpu.memory_space<vmem>>, vector<128x128xbf16>
    %cst = arith.constant dense<0.000000e+00> : vector<8x128xf32>
    %2 = tpu.matmul %0, %1, %cst {dimension_numbers = #tpu.dot_dimension_numbers<[1], [0], [0], [1], [0, 0, 1, 1], [], []>} : vector<8x128xbf16>, vector<128x128xbf16>, vector<8x128xf32> -> vector<8x128xf32>
    %c0_3 = arith.constant 0 : index
    %c0_4 = arith.constant 0 : index
    %3 = vector.load %arg5[%c0_3, %c0_4] : memref<1x128xf32, #tpu.memory_space<vmem>>, vector<1x128xf32>
    %4 = vector.broadcast %3 : vector<1x128xf32> to vector<8x128xf32>
    %5 = arith.addf %2, %4 : vector<8x128xf32>
    %6 = arith.truncf %5 : vector<8x128xf32> to vector<8x128xbf16>
    %c0_5 = arith.constant 0 : index
    %c0_6 = arith.constant 0 : index
    %7 = vector.load %arg6[%c0_5, %c0_6] : memref<8x128xbf16, #tpu.memory_space<vmem>>, vector<8x128xbf16>
    tpu.vector_store %arg6[%c0_5, %c0_6], %6 {strides = array<i32>} : memref<8x128xbf16, #tpu.memory_space<vmem>>, vector<8x128xbf16>,
    return
  }
  func.func @transform_0(%arg0: i32, %arg1: i32, %arg2: i32) -> (i32, i32) {
    %c0_i32 = arith.constant 0 : i32
    return %arg0, %arg2 : i32, i32
  }
  func.func @transform_1(%arg0: i32, %arg1: i32, %arg2: i32) -> (i32, i32) {
    %c0_i32 = arith.constant 0 : i32
    return %arg2, %arg1 : i32, i32
  }
  func.func @transform_2(%arg0: i32, %arg1: i32, %arg2: i32) -> (i32, i32) {
    %c0_i32 = arith.constant 0 : i32
    %c0_i32_0 = arith.constant 0 : i32
    return %c0_i32, %arg1 : i32, i32
  }
  func.func @transform_3(%arg0: i32, %arg1: i32, %arg2: i32) -> (i32, i32) {
    %c0_i32 = arith.constant 0 : i32
    return %arg0, %arg1 : i32, i32
  }
}

module attributes {stable_mosaic.version = 11 : i64} {
  func.func @_linear_kernel(%arg0: i32, %arg1: i32, %arg2: i32, %arg3: memref<8x128xbf16, #tpu.memory_space<vmem>>, %arg4: memref<128x128xbf16, #tpu.memory_space<vmem>>, %arg5: memref<1x128xf32, #tpu.memory_space<vmem>>, %arg6: memref<128x128xbf16, #tpu.memory_space<vmem>>, %arg7: memref<1x128xf32, #tpu.memory_space<vmem>>, %arg8: memref<128x128xf32, #tpu.memory_space<vmem>>, %arg9: memref<8x128xbf16, #tpu.memory_space<vmem>>) attributes {dimension_semantics = [#tpu.dimension_semantics<parallel>, #tpu.dimension_semantics<parallel>, #tpu.dimension_semantics<arbitrary>], iteration_bounds = array<i64: 2, 1, 1>, scalar_prefetch = 0 : i64, scratch_operands = 0 : i64, tpu.core_type = #tpu.core_type<tc>, window_params = [{transform_indices = @transform_0, window_bounds = array<i64: 8, 128>}, {transform_indices = @transform_1, window_bounds = array<i64: 128, 128>}, {transform_indices = @transform_2, window_bounds = array<i64: 1, 128>}, {transform_indices = @transform_3, window_bounds = array<i64: 128, 128>}, {pipeline_mode = #tpu.pipeline_mode<synchronous>, transform_indices = @transform_4, window_bounds = array<i64: 1, 128>}, {transform_indices = @transform_5, window_bounds = array<i64: 128, 128>}, {transform_indices = @transform_6, window_bounds = array<i64: 8, 128>}]} {
    %c0 = arith.constant 0 : index
    %c0_0 = arith.constant 0 : index
    %0 = vector.load %arg3[%c0, %c0_0] : memref<8x128xbf16, #tpu.memory_space<vmem>>, vector<8x128xbf16>
    %c0_1 = arith.constant 0 : index
    %c0_2 = arith.constant 0 : index
    %1 = vector.load %arg4[%c0_1, %c0_2] : memref<128x128xbf16, #tpu.memory_space<vmem>>, vector<128x128xbf16>
    %cst = arith.constant dense<0.000000e+00> : vector<8x128xf32>
    %2 = tpu.matmul %0, %1, %cst {dimension_numbers = #tpu.dot_dimension_numbers<[1], [0], [0], [1], [0, 0, 1, 1], [], []>} : vector<8x128xbf16>, vector<128x128xbf16>, vector<8x128xf32> -> vector<8x128xf32>
    %c0_3 = arith.constant 0 : index
    %c0_4 = arith.constant 0 : index
    %3 = vector.load %arg6[%c0_3, %c0_4] : memref<128x128xbf16, #tpu.memory_space<vmem>>, vector<128x128xbf16>
    %cst_5 = arith.constant dense<0.000000e+00> : vector<8x128xf32>
    %4 = tpu.matmul %0, %3, %cst_5 {dimension_numbers = #tpu.dot_dimension_numbers<[1], [0], [0], [1], [0, 0, 1, 1], [], []>} : vector<8x128xbf16>, vector<128x128xbf16>, vector<8x128xf32> -> vector<8x128xf32>
    %c0_6 = arith.constant 0 : index
    %c0_7 = arith.constant 0 : index
    %5 = vector.load %arg5[%c0_6, %c0_7] : memref<1x128xf32, #tpu.memory_space<vmem>>, vector<1x128xf32>
    %6 = vector.broadcast %5 : vector<1x128xf32> to vector<8x128xf32>
    %7 = arith.addf %2, %6 : vector<8x128xf32>
    %c0_8 = arith.constant 0 : index
    %c0_9 = arith.constant 0 : index
    %8 = vector.load %arg7[%c0_8, %c0_9] : memref<1x128xf32, #tpu.memory_space<vmem>>, vector<1x128xf32>
    %9 = vector.broadcast %8 : vector<1x128xf32> to vector<8x128xf32>
    %10 = arith.addf %4, %9 : vector<8x128xf32>
    %11 = arith.negf %10 : vector<8x128xf32>
    %12 = math.exp %11 : vector<8x128xf32>
    %cst_10 = arith.constant 1.000000e+00 : f32
    %13 = vector.broadcast %cst_10 : f32 to vector<8x128xf32>
    %14 = arith.addf %13, %12 : vector<8x128xf32>
    %15 = arith.divf %13, %14 : vector<8x128xf32>
    %c0_11 = arith.constant 0 : index
    %c0_12 = arith.constant 0 : index
    %16 = vector.load %arg8[%c0_11, %c0_12] : memref<128x128xf32, #tpu.memory_space<vmem>>, vector<128x128xf32>
    %cst_13 = arith.constant dense<0.000000e+00> : vector<8x128xf32>
    %17 = tpu.matmul %15, %16, %cst_13 {dimension_numbers = #tpu.dot_dimension_numbers<[1], [0], [0], [1], [0, 0, 1, 1], [], []>} : vector<8x128xf32>, vector<128x128xf32>, vector<8x128xf32> -> vector<8x128xf32>
    %18 = arith.mulf %7, %17 : vector<8x128xf32>
    %19 = arith.truncf %18 : vector<8x128xf32> to vector<8x128xbf16>
    %c0_14 = arith.constant 0 : index
    %c0_15 = arith.constant 0 : index
    %20 = vector.load %arg9[%c0_14, %c0_15] : memref<8x128xbf16, #tpu.memory_space<vmem>>, vector<8x128xbf16>
    tpu.vector_store %arg9[%c0_14, %c0_15], %19 {strides = array<i32>} : memref<8x128xbf16, #tpu.memory_space<vmem>>, vector<8x128xbf16>,
    return
  }
  func.func @transform_0(%arg0: i32, %arg1: i32, %arg2: i32) -> (i32, i32) {
    %c0_i32 = arith.constant 0 : i32
    return %arg0, %arg2 : i32, i32
  }
  func.func @transform_1(%arg0: i32, %arg1: i32, %arg2: i32) -> (i32, i32) {
    %c0_i32 = arith.constant 0 : i32
    return %arg2, %arg1 : i32, i32
  }
  func.func @transform_2(%arg0: i32, %arg1: i32, %arg2: i32) -> (i32, i32) {
    %c0_i32 = arith.constant 0 : i32
    %c0_i32_0 = arith.constant 0 : i32
    return %c0_i32, %arg1 : i32, i32
  }
  func.func @transform_3(%arg0: i32, %arg1: i32, %arg2: i32) -> (i32, i32) {
    %c0_i32 = arith.constant 0 : i32
    %c0_i32_0 = arith.constant 0 : i32
    return %arg2, %c0_i32 : i32, i32
  }
  func.func @transform_4(%arg0: i32, %arg1: i32, %arg2: i32) -> (i32, i32) {
    %c0_i32 = arith.constant 0 : i32
    %c0_i32_0 = arith.constant 0 : i32
    %c0_i32_1 = arith.constant 0 : i32
    return %c0_i32, %c0_i32_0 : i32, i32
  }
  func.func @transform_5(%arg0: i32, %arg1: i32, %arg2: i32) -> (i32, i32) {
    %c0_i32 = arith.constant 0 : i32
    %c0_i32_0 = arith.constant 0 : i32
    return %c0_i32, %arg1 : i32, i32
  }
  func.func @transform_6(%arg0: i32, %arg1: i32, %arg2: i32) -> (i32, i32) {
    %c0_i32 = arith.constant 0 : i32
    return %arg0, %arg1 : i32, i32
  }
}

</mosaic_0001>

<bundles_post_ra>
// kernel: so2_transformer_forward.16
= control target key start
LH: loop header
LB: loop body
LE: loop exit
PB: predicated region body
PF: predicated region fallthrough
CT: control target
= control target key end

     0   :  { %s775_s15 = smov 0   ;;  %s777_s16 = smov 0   ;;  %s866_s0 = inlined_call_operand.vmem [shape: bf16[16,256], index: 0, kind: input, shape index: {}]   ;;  %s867_s1 = inlined_call_operand.vmem [shape: bf16[256,128], index: 1, kind: input, shape index: {}]   ;;  %s868_s2 = inlined_call_operand.vmem [shape: f32[1,128], index: 2, kind: input, shape index: {}]   ;;  %s869_s3 = inlined_call_operand.vmem [shape: bf16[16,128], index: 3, kind: input, shape index: {}]   ;;  %s870_s4 = inlined_call_operand.vmem [shape: bf16[16,128], index: 4, kind: output, shape index: {}]  }
   0x1   :  { %s779_s17 = smov 0  }
   0x2 LB: > { %s33_s18 = sadd.s32 1, %s744_s16  ;;  %p635_p0 = scmp.ge.s32.totalorder %s748_s17, 1  ;;  %s748_s17 = sphi %s779_s17, %s14_s17   ;;  %s744_s16 = sphi %s777_s16, %s872_s16   ;;  %s740_s15 = sphi %s775_s15, %s871_s15  }
   0x3   : > { %p35_p1 = scmp.ge.s32.totalorder %s33_s18, 2  ;;  %p228_p2 = scmp.lt.s32.totalorder %s748_s17, 3 }
   0x5   : > { %s874_s18 = smov (%p35_p1, %s33_s18), 0  ;;  %p229_p3 = pnand %p635_p0, %p228_p2 }
   0x6   : > { %p279_p4 = scmp.lt.s32.totalorder (!%p229_p3), %s740_s15, 1 }
   0x7   : > { %232 = sbr.rel (%p229_p3) target bundleno = 249 (0xf9), region = 36 }
   0xc   : > { %v708_v0 = vld [vmem:[%s867_s1 + $0x78] sm:$0xff]   ;;  %v710_v2 = vld [vmem:[%s867_s1 + $0x70] sm:$0xff]   ;;  %v712_v4 = vld [vmem:[%s867_s1 + $0x68] sm:$0xff]   ;;  %s876_s15 = smov (!%p279_p4, %s740_s15), 1 }
   0xd   : > { %v709_v1 = vld [vmem:[%s867_s1 + $0x38] sm:$0xff]   ;;  %662 = vmatprep.subr.bf16.mxu0 %v708_v0  ;;  %v711_v3 = vld [vmem:[%s867_s1 + $0x30] sm:$0xff]   ;;  %v713_v5 = vld [vmem:[%s867_s1 + $0x28] sm:$0xff]   ;;  %s661_s7 = sshll.u32 %s876_s15, 3 }
   0xe   : > { %663 = vmatpush3.bf16.msra.mxu0 %v709_v1  ;;  %v714_v6 = vld [vmem:[%s867_s1 + $0x60] sm:$0xff]   ;;  %v716_v8 = vld [vmem:[%s867_s1 + $0x58] sm:$0xff]   ;;  %s286_s14 = scalar_lea.vmem %s866_s0, %s661_s7  ;;  %v718_v10 = vld [vmem:[%s867_s1 + $0x50] sm:$0xff]   ;;  %s638_s7 = sshll.u32 %s876_s15, 2 }
   0xf   : > { %664 = vmatprep.subr.bf16.mxu0 %v710_v2  ;;  %v715_v7 = vld [vmem:[%s867_s1 + $0x20] sm:$0xff]   ;;  %v717_v9 = vld [vmem:[%s867_s1 + $0x18] sm:$0xff]   ;;  %v719_v13 = vld [vmem:[%s867_s1 + $0x10] sm:$0xff]   ;;  %s306_s10 = scalar_lea.vmem %s869_s3, %s638_s7  ;;  %s313_s15 = scalar_lea.vmem %s870_s4, %s638_s7 }
  0x10   : > { %v315_v11 = vld [vmem:[%s286_s14] sm:$0xff]  ;;  %v720_v14 = vld [vmem:[%s867_s1 + $0x48] sm:$0xff]  }
  0x11   : > { %v642_v12 = vcombine.high %v315_v11, %v315_v11  ;;  %v721_v15 = vld [vmem:[%s867_s1 + $0x8] sm:$0xff]   ;;  %v722_v16 = vld [vmem:[%s867_s1 + $0x40] sm:$0xff]   ;;  %v641_v18 = vcombine.low %v315_v11, %v315_v11 }
  0x12   : > { %665 = vmatpush3.bf16.msra.mxu0 %v711_v3  ;;  %v723_v17 = vld [vmem:[%s867_s1] sm:$0xff]  }
  0x13   : > { %666 = vmatprep.subr.bf16.mxu0 %v712_v4  ;;  %490 = vmatprep.mubr.bf16.mxu0 %v642_v12  ;;  %v498_v20 = vld [vmem:[%s306_s10] sm:$0xf] }
  0x14   : > { %v640_v21 = vld [vmem:[%s868_s2] ss:$0 sm:$0xff]  ;;  %v499_v24 = vunpack.c.l.bf16 %v498_v20 }
  0x16   : > { %667 = vmatpush3.bf16.msra.mxu0 %v713_v5 }
  0x17   : > { %668 = vmatprep.subr.bf16.mxu0 %v714_v6 }
  0x1a   : > { %669 = vmatpush3.bf16.msra.mxu0 %v715_v7 }
  0x1b   : > { %670 = vmatprep.subr.bf16.mxu0 %v716_v8 }
  0x1e   : > { %671 = vmatpush3.bf16.msra.mxu0 %v717_v9 }
  0x1f   : > { %672 = vmatprep.subr.bf16.mxu0 %v718_v10 }
  0x22   : > { %673 = vmatpush3.bf16.msra.mxu0 %v719_v13 }
  0x23   : > { %674 = vmatprep.subr.bf16.mxu0 %v720_v14 }
  0x26   : > { %675 = vmatpush3.bf16.msra.mxu0 %v721_v15 }
  0x27   : > { %676 = vmatprep.subr.bf16.mxu0 %v722_v16 }
  0x2a   : > { %677 = vmatpush3.bf16.msra.mxu0 %v723_v17 }
  0x2d   : > { %491 = vmatmul.mubr.bf16.vlgmr.msra.gmra.mxu0 %v641_v18 }
  0xed   : > { %v678_v19 = vpop.f32.mrf.mxu0 }
  0xef   : > { %v679_v22 = vpop.f32.mrf.mxu0 }
  0xf0   : > { %v680_v23 = vadd.f32 %v679_v22, %v678_v19 }
  0xf1   : > { %v681_v25 = vpop.f32.mrf.mxu0 }
  0xf2   : > { %v493_v26 = vadd.f32 %v680_v23, %v640_v21 }
  0xf3   : > { %v682_v27 = vpop.f32.mrf.mxu0 }
  0xf4   : > { %v500_v28 = vadd.f32 %v499_v24, %v493_v26 }
  0xf6   : > { %v501_v29 = vpack.c.bf16 %v500_v28, %v500_v28 }
  0xf8   : > { %502 = vst [vmem:[%s313_s15] sm:$0xf] %v501_v29 }
  0xf9 PF: > { %s14_s17 = sadd.s32 1, %s748_s17   ;;  %s871_s15 = smov %s744_s16 }
  0xfa   : > { %p11_p5 = scmp.ge.s32.totalorder %s14_s17, 4   ;;  %s872_s16 = smov %s874_s18 }
  0xfc   :  { %13 = sbr.rel (!%p11_p5) target bundleno = 2 (0x2), region = 75 }

// kernel: so2_transformer_forward.13
= control target key start
LH: loop header
LB: loop body
LE: loop exit
PB: predicated region body
PF: predicated region fallthrough
CT: control target
= control target key end

     0   :  { %8 = vsyncpa [#allocation3], 0  ;;  %s642_s12 = smov 0   ;;  %s644_s13 = smov 0   ;;  %s704_s0 = inlined_call_operand.vmem [shape: bf16[16,128], index: 0, kind: input, shape index: {}]   ;;  %s705_s1 = inlined_call_operand.hbm [shape: bf16[128,128], index: 1, kind: input, shape index: {}]   ;;  %s706_s2 = inlined_call_operand.vmem [shape: f32[1,128], index: 2, kind: input, shape index: {}]   ;;  %s707_s3 = inlined_call_operand.vmem [shape: bf16[16,128], index: 3, kind: output, shape index: {}]  }
   0x1   :  { %s646_s14 = smov 0  }
   0x2 LB: > { %s466_s15 = sadd.s32 4294967295, %s615_s14   ;;  %s33_s16 = sadd.s32 1, %s611_s13  ;;  %s615_s14 = sphi %s646_s14, %s14_s14   ;;  %s611_s13 = sphi %s644_s13, %s711_s13   ;;  %s607_s12 = sphi %s642_s12, %s710_s12  }
   0x3   : > { %p35_p0 = scmp.ge.s32.totalorder %s33_s16, 2  ;;  %p468_p1 = scmp.ge.s32.totalorder %s615_s14, 1 }
   0x4   : > { %p148_p2 = scmp.lt.s32.totalorder %s615_s14, 3  ;;  %p667_p4 = scmp.eq.s32.totalorder %s466_s15, 0 }
   0x5   : > { %s713_s16 = smov (%p35_p0, %s33_s16), 0  ;;  %s617_s19 = smov [#allocation2]  }
   0x6   : > { %p663_p3 = pnand %p468_p1, %p148_p2  ;;  %s164_s20 = sshll.u32 %s617_s19, 4  ;;  %s165_s20 = int_to_ptr.vmem [resolvable:$true] %s164_s20 }
   0x7   : > { %s574_s21 = scalar_lea.vmem %s165_s20, 1024  ;;  %p582_p11 = scmp.lt.s32.totalorder %s165_s20, %s165_s20 }
   0x8   : > { %p520_p5 = pneg %p663_p3  ;;  %p575_p8 = scmp.ne.s32.totalorder %s165_s20, %s574_s21 }
   0x9   : > { %p583_p12 = scmp.lt.s32.totalorder %s574_s21, %s574_s21 }
   0xa   : > { %p521_p6 = pnand %p667_p4, %p520_p5 }
   0xb   : > { %p584_p13 = por %p583_p12, %p582_p11 }
   0xc   : > { %p565_p7 = pneg %p521_p6 }
   0xe   : > { %p577_p9 = pnand %p575_p8, %p565_p7 }
  0x10   : > { %p578_p10 = pneg %p577_p9 }
  0x12   : > { %p585_p0 = pnand %p584_p13, %p578_p10 }
  0x14   : > { %588 = shalt.err (!%p585_p0)
}
  0x15   : > { %s618_s22 = smov 64   ;;  %s619_s23 = smov 4  }
  0x16   : > { %523 = dma.hbm_to_vmem [thread:$0]  (!%p521_p6), %s705_s1, 1024, %s165_s20, [#allocation3], %s618_s22, %s618_s22, %s619_s23  }
  0x17   : > { %196 = sbr.rel (%p663_p3) target bundleno = 261 (0x105), region = 32 }
  0x1c   : > { %602 = dma.done.wait (%p667_p4), [#allocation3], 1024  }
  0x1d   : > { %604 = vsyncadd (%p667_p4), [#allocation3], 4294966272  ;;  %v620_v0 = vmov 0.0   ;;  %vm621_vm0 = vmmov 0   ;;  %v555_v1 = vld [vmem:[#allocation2 + $0x38] sm:$0xff]   ;;  %v556_v2 = vld [vmem:[#allocation2 + $0x30] sm:$0xff]  }
  0x1e   : > { %496 = vmatprep.subr.bf16.mxu0 %v620_v0  ;;  %512 = vmatprep.mubr.msk.bf16.mxu0 %vm621_vm0, %v620_v0  ;;  %v557_v3 = vld [vmem:[#allocation2 + $0x28] sm:$0xff]   ;;  %v558_v4 = vld [vmem:[#allocation2 + $0x20] sm:$0xff]   ;;  %v559_v5 = vld [vmem:[#allocation2 + $0x18] sm:$0xff]   ;;  %p227_p1 = scmp.lt.s32.totalorder %s607_s12, 1 }
  0x1f   : > { %497 = vmatpush3.bf16.msra.mxu0 %v555_v1  ;;  %v560_v6 = vld [vmem:[#allocation2 + $0x10] sm:$0xff]   ;;  %v561_v7 = vld [vmem:[#allocation2 + $0x8] sm:$0xff]   ;;  %v562_v8 = vld [vmem:[#allocation2] sm:$0xff]  }
  0x20   : > { %498 = vmatprep.subr.bf16.mxu0 %v620_v0  ;;  %s715_s12 = smov (!%p227_p1, %s607_s12), 1  ;;  %v476_v10 = vld [vmem:[%s706_s2] ss:$0 sm:$0xff] }
  0x21   : > { %s474_s26 = sshll.u32 %s715_s12, 2 }
  0x22   : > { %s233_s29 = scalar_lea.vmem %s704_s0, %s474_s26  ;;  %s244_s7 = scalar_lea.vmem %s707_s3, %s474_s26 }
  0x23   : > { %499 = vmatpush3.bf16.msra.mxu0 %v556_v2  ;;  %v246_v9 = vld [vmem:[%s233_s29] sm:$0xf] }
  0x24   : > { %500 = vmatprep.subr.bf16.mxu0 %v620_v0 }
  0x27   : > { %501 = vmatpush3.bf16.msra.mxu0 %v557_v3 }
  0x28   : > { %502 = vmatprep.subr.bf16.mxu0 %v620_v0 }
  0x2b   : > { %503 = vmatpush3.bf16.msra.mxu0 %v558_v4 }
  0x2c   : > { %504 = vmatprep.subr.bf16.mxu0 %v620_v0 }
  0x2f   : > { %505 = vmatpush3.bf16.msra.mxu0 %v559_v5 }
  0x30   : > { %506 = vmatprep.subr.bf16.mxu0 %v620_v0 }
  0x33   : > { %507 = vmatpush3.bf16.msra.mxu0 %v560_v6 }
  0x34   : > { %508 = vmatprep.subr.bf16.mxu0 %v620_v0 }
  0x37   : > { %509 = vmatpush3.bf16.msra.mxu0 %v561_v7 }
  0x38   : > { %510 = vmatprep.subr.bf16.mxu0 %v620_v0 }
  0x3b   : > { %511 = vmatpush3.bf16.msra.mxu0 %v562_v8 }
  0x3e   : > { %513 = vmatmul.mubr.bf16.vlgmr.msra.gmra.mxu0 %v246_v9 }
  0xfe   : > { %v352_v11 = vpop.f32.mrf.mxu0 }
  0xff   : > { %v353_v12 = vadd.f32 %v476_v10, %v352_v11 }
 0x100   : > { %v514_v13 = vpop.f32.mrf.mxu0 }
 0x101   : > { %v358_v14 = vpack.c.bf16 %v353_v12, %v353_v12 }
 0x102   : > { %v355_v15 = vpop.f32.mrf.mxu0 }
 0x103   : > { %359 = vst [vmem:[%s244_s7] sm:$0xf] %v358_v14 }
 0x104   : > { %v515_v16 = vpop.f32.mrf.mxu0 }
 0x105 PF: > { %s14_s14 = sadd.s32 1, %s615_s14   ;;  %s710_s12 = smov %s611_s13 }
 0x106   : > { %p11_p2 = scmp.ge.s32.totalorder %s14_s14, 4   ;;  %s711_s13 = smov %s713_s16 }
 0x108   :  { %13 = sbr.rel (!%p11_p2) target bundleno = 2 (0x2), region = 71 }
 0x10d   :  { %385 = vsyncpa [#allocation3], 1 }
 0x10e   :  { %387 = vsyncpa [#allocation3 + $0x1], 1 }

// kernel: so2_transformer_forward.14
= control target key start
LH: loop header
LB: loop body
LE: loop exit
PB: predicated region body
PF: predicated region fallthrough
CT: control target
= control target key end

     0   :  { %8 = vsyncpa [#allocation3], 0  ;;  %s1140_s0 = inlined_call_operand.vmem [shape: bf16[16,128], index: 0, kind: input, shape index: {}]   ;;  %s1141_s1 = inlined_call_operand.hbm [shape: bf16[128,768], index: 1, kind: input, shape index: {}]   ;;  %s1142_s2 = inlined_call_operand.vmem [shape: f32[1,768], index: 2, kind: input, shape index: {}]   ;;  %s1143_s3 = inlined_call_operand.vmem [shape: bf16[16,768], index: 3, kind: output, shape index: {}]  }
   0x1   :  { %10 = vsyncpa [#allocation3 + $0x1], 0  ;;  %s999_s12 = smov 0   ;;  %s1001_s13 = smov 0  }
   0x2   :  { %s1003_s14 = smov 0   ;;  %s1005_s15 = smov 0  }
   0x3   :  { %s1007_s16 = smov 0   ;;  %s1009_s17 = smov 0  }
   0x4 LB: > { %s717_s18 = sadd.s32 4294967295, %s970_s17   ;;  %s31_s19 = sadd.s32 1, %s966_s16  ;;  %s970_s17 = sphi %s1009_s17, %s16_s17   ;;  %s966_s16 = sphi %s1007_s16, %s1152_s16   ;;  %s962_s15 = sphi %s1005_s15, %s1151_s15   ;;  %s958_s14 = sphi %s1003_s14, %s1150_s14   ;;  %s954_s13 = sphi %s1001_s13, %s1149_s13   ;;  %s950_s12 = sphi %s999_s12, %s1148_s12  }
   0x5   : > { %p33_p0 = scmp.ge.s32.totalorder %s31_s19, 2  ;;  %s72_s20 = sadd.s32 1, %s958_s14 }
   0x6   : > { %p79_p1 = scmp.ne.s32.totalorder %s958_s14, %s954_s13  ;;  %p80_p2 = scmp.eq.s32.totalorder %s970_s17, 0 }
   0x7   : > { %s1154_s19 = smov (%p33_p0, %s31_s19), 0  ;;  %p85_p4 = scmp.ne.s32.totalorder %s954_s13, %s950_s12 }
   0x8   : > { %p1035_p3 = por %p80_p2, %p79_p1  ;;  %s68_s22 = ssub.s32 %s966_s16, %s1154_s19 }
   0x9   : > { %p86_p5 = scmp.eq.s32.totalorder %s717_s18, 0  ;;  %p70_p6 = scmp.eq.s32.totalorder %s68_s22, 0 }
   0xa   : > { %p137_p7 = scmp.eq.s32.totalorder %s717_s18, 1  ;;  %p804_p10 = scmp.lt.s32.totalorder %s970_s17, 2 }
   0xb   : > { %p1042_p8 = por %p86_p5, %p85_p4  ;;  %s175_s26 = sand.u32 1, %s958_s14  }
   0xc   : > { %s1047_s24 = scalar_select %p70_p6, %s958_s14, %s72_s20  }
   0xd   : > { %p1049_p9 = por %p137_p7, %p79_p1  ;;  %s760_s27 = smul.u32 192, %s966_s16 }
   0xe   : > { %s795_s28 = smul.u32 192, %s175_s26  ;;  %p1061_p11 = pnand %p804_p10, %p1035_p3 }
   0xf   : > { %s188_s4 = scalar_lea.hbm %s1141_s1, %s760_s27  ;;  %p723_p12 = scmp.ge.s32.totalorder %s970_s17, 1 }
  0x10   : > { %s179_s6 = scalar_lea.vmem [#allocation2], %s795_s28  ;;  %s176_s8 = scalar_lea.sflag [#allocation3], %s175_s26 }
  0x11   : > { %s189_s7 = sshll.u32 %s179_s6, 4  ;;  %p894_p13 = pneg %p1061_p11  ;;  %s190_s7 = int_to_ptr.vmem [resolvable:$true] %s189_s7 }
  0x12   : > { %s905_s9 = scalar_lea.vmem %s190_s7, 3072  ;;  %s972_s10 = smov [#allocation2]  }
  0x13   : > { %p906_p0 = scmp.ne.s32.totalorder %s190_s7, %s905_s9  ;;  %s910_s11 = sshll.u32 %s972_s10, 4  ;;  %s911_s11 = int_to_ptr.vmem [resolvable:$false] %s910_s11 }
  0x14   : > { %s912_s12 = scalar_lea.vmem %s911_s11, 6144  ;;  %p913_p3 = scmp.lt.s32.totalorder %s190_s7, %s911_s11 }
  0x15   : > { %p908_p1 = pnand %p906_p0, %p894_p13  ;;  %p914_p4 = scmp.lt.s32.totalorder %s912_s12, %s905_s9 }
  0x17   : > { %p909_p2 = pneg %p908_p1  ;;  %p915_p5 = por %p914_p4, %p913_p3 }
  0x19   : > { %p916_p6 = pnand %p915_p5, %p909_p2 }
  0x1b   : > { %919 = shalt.err (!%p916_p6)
}
  0x1c   : > { %s973_s18 = smov 384   ;;  %s974_s20 = smov 192  }
  0x1d   : > { %s975_s21 = smov 12   ;;  %p205_p7 = scmp.lt.s32.totalorder %s970_s17, 3 }
  0x1e   : > { %803 = dma.hbm_to_vmem [thread:$0]  (!%p1061_p11), %s188_s4, 3072, %s190_s7, %s176_s8, %s973_s18, %s974_s20, %s975_s21  }
  0x1f   : > { %p206_p10 = pnand %p723_p12, %p205_p7 }
  0x20   : > { %s1074_s22 = sand.u32 (!%p206_p10), 1, %s954_s13  }
  0x21   : > { %209 = sbr.rel (%p206_p10) target bundleno = 285 (0x11d), region = 32  ;;  %s212_s27 = scalar_lea.sflag (!%p206_p10), [#allocation3], %s1074_s22 }
  0x22   : > { %s796_s26 = smul.u32 (!%p206_p10), 192, %s1074_s22 }
  0x24   : > { %s1078_s28 = scalar_lea.vmem (!%p206_p10), [#allocation2], %s796_s26 }
  0x26   : > { %945 = dma.done.wait (%p1042_p8), %s212_s27, 3072  }
  0x27   : > { %947 = vsyncadd (%p1042_p8), %s212_s27, 4294964224  ;;  %v976_v0 = vmov 0.0   ;;  %vm977_vm0 = vmmov 0   ;;  %v978_v1 = vmov 0   ;;  %v859_v2 = vld [vmem:[%s1078_s28 + $0xac] ss:$12 sps:$4 sm:$0xff]   ;;  %v304_v27 = vlaneseq }
  0x28   : > { %775 = vmatprep.subr.bf16.mxu1 %v976_v0  ;;  %791 = vmatprep.mubr.msk.bf16.mxu1 %vm977_vm0, %v976_v0  ;;  %v861_v3 = vld [vmem:[%s1078_s28 + $0xb0] ss:$12 sps:$4 sm:$0xff]   ;;  %v862_v4 = vld [vmem:[%s1078_s28 + $0xa8] ss:$12 sps:$4 sm:$0xff]   ;;  %v865_v6 = vld [vmem:[%s1078_s28 + $0x98] ss:$12 sps:$4 sm:$0xff]  }
  0x29   : > { %485 = vmatprep.mubr.bf16.mxu0 %v978_v1  ;;  %453 = vmatprep.subr.bf16.mxu0 %v859_v2  ;;  %v863_v5 = vld [vmem:[%s1078_s28 + $0x94] ss:$12 sps:$4 sm:$0xff]   ;;  %v866_v7 = vld [vmem:[%s1078_s28 + $0x90] ss:$12 sps:$4 sm:$0xff]   ;;  %v870_v10 = vld [vmem:[%s1078_s28 + $0x78] ss:$12 sps:$4 sm:$0xff]  }
  0x2a   : > { %776 = vmatpush3.bf16.msra.mxu1 %v861_v3  ;;  %454 = vmatpush1.bf16.msra.mxu0 %v862_v4  ;;  %v867_v8 = vld [vmem:[%s1078_s28 + $0x7c] ss:$12 sps:$4 sm:$0xff]   ;;  %v869_v9 = vld [vmem:[%s1078_s28 + $0x80] ss:$12 sps:$4 sm:$0xff]   ;;  %v871_v11 = vld [vmem:[%s1078_s28 + $0x64] ss:$12 sps:$4 sm:$0xff]  }
  0x2b   : > { %777 = vmatprep.subr.bf16.mxu1 %v976_v0  ;;  %455 = vmatprep.subr.bf16.mxu0 %v863_v5  ;;  %v873_v12 = vld [vmem:[%s1078_s28 + $0x68] ss:$12 sps:$4 sm:$0xff]   ;;  %v874_v13 = vld [vmem:[%s1078_s28 + $0x60] ss:$12 sps:$4 sm:$0xff]   ;;  %v877_v15 = vld [vmem:[%s1078_s28 + $0x50] ss:$12 sps:$4 sm:$0xff]  }
  0x2c   : > { %v875_v14 = vld [vmem:[%s1078_s28 + $0x4c] ss:$12 sps:$4 sm:$0xff]   ;;  %v878_v16 = vld [vmem:[%s1078_s28 + $0x48] ss:$12 sps:$4 sm:$0xff]   ;;  %v882_v19 = vld [vmem:[%s1078_s28 + $0x30] ss:$12 sps:$4 sm:$0xff]  }
  0x2d   : > { %v879_v17 = vld [vmem:[%s1078_s28 + $0x34] ss:$12 sps:$4 sm:$0xff]   ;;  %v881_v18 = vld [vmem:[%s1078_s28 + $0x38] ss:$12 sps:$4 sm:$0xff]   ;;  %v883_v20 = vld [vmem:[%s1078_s28 + $0x1c] ss:$12 sps:$4 sm:$0xff]  }
  0x2e   : > { %778 = vmatpush3.bf16.msra.mxu1 %v865_v6  ;;  %456 = vmatpush1.bf16.msra.mxu0 %v866_v7  ;;  %v885_v21 = vld [vmem:[%s1078_s28 + $0x20] ss:$12 sps:$4 sm:$0xff]   ;;  %v886_v22 = vld [vmem:[%s1078_s28 + $0x18] ss:$12 sps:$4 sm:$0xff]   ;;  %v889_v24 = vld [vmem:[%s1078_s28 + $0x8] ss:$12 sps:$4 sm:$0xff]  }
  0x2f   : > { %779 = vmatprep.subr.bf16.mxu1 %v976_v0  ;;  %457 = vmatprep.subr.bf16.mxu0 %v867_v8  ;;  %v887_v23 = vld [vmem:[%s1078_s28 + $0x4] ss:$12 sps:$4 sm:$0xff]   ;;  %v890_v25 = vld [vmem:[%s1078_s28] ss:$12 sps:$4 sm:$0xff]   ;;  %s260_s30 = smul.u32 3, %s962_s15  ;;  %v305_v28 = vshrl.u32 %v304_v27, 7 }
  0x30   : > { %v891_v26 = vld [vmem:[%s1140_s0] sm:$0xff]   ;;  %s797_s7 = smul.u32 24, %s1074_s22 }
  0x31   : > { %p261_p8 = scmp.lt.s32.totalorder %s260_s30, 5  ;;  %v314_v29 = vsub.s32 2, %v305_v28  ;;  %v306_v31 = vsub.s32 0, %v305_v28  ;;  %v310_v32 = vsub.s32 1, %v305_v28  ;;  %s765_s9 = smul.u32 (%p1049_p9), 12, %s962_s15 }
  0x32   : > { %780 = vmatpush3.bf16.msra.mxu1 %v869_v9  ;;  %458 = vmatpush1.bf16.msra.mxu0 %v870_v10  ;;  %s248_s8 = scalar_lea.vmem [#allocation4], %s797_s7 }
  0x33   : > { %781 = vmatprep.subr.bf16.mxu1 %v976_v0  ;;  %459 = vmatprep.subr.bf16.mxu0 %v871_v11  ;;  %s1156_s30 = smov (!%p261_p8, %s260_s30), 5  ;;  %s573_s12 = scalar_lea.vmem (%p1049_p9), %s1143_s3, %s765_s9 }
  0x34   : > { %s263_s6 = scalar_lea.vmem %s1142_s2, %s1156_s30 }
  0x35   : > { %v302_v30 = vld [vmem:[%s263_s6] sm:$0x7] }
  0x36   : > { %782 = vmatpush3.bf16.msra.mxu1 %v873_v12  ;;  %460 = vmatpush1.bf16.msra.mxu0 %v874_v13  ;;  %v315_v33 = vrot.slane %v302_v30, %v314_v29  ;;  %v307_v35 = vrot.slane %v302_v30, %v306_v31  ;;  %v311_v36 = vrot.slane %v302_v30, %v310_v32 }
  0x37   : > { %783 = vmatprep.subr.bf16.mxu1 %v976_v0  ;;  %461 = vmatprep.subr.bf16.mxu0 %v875_v14 }
  0x3a   : > { %784 = vmatpush3.bf16.msra.mxu1 %v877_v15  ;;  %462 = vmatpush1.bf16.msra.mxu0 %v878_v16 }
  0x3b   : > { %785 = vmatprep.subr.bf16.mxu1 %v976_v0  ;;  %463 = vmatprep.subr.bf16.mxu0 %v879_v17 }
  0x3e   : > { %786 = vmatpush3.bf16.msra.mxu1 %v881_v18  ;;  %464 = vmatpush1.bf16.msra.mxu0 %v882_v19 }
  0x3f   : > { %787 = vmatprep.subr.bf16.mxu1 %v976_v0  ;;  %465 = vmatprep.subr.bf16.mxu0 %v883_v20 }
  0x42   : > { %788 = vmatpush3.bf16.msra.mxu1 %v885_v21  ;;  %466 = vmatpush1.bf16.msra.mxu0 %v886_v22 }
  0x43   : > { %789 = vmatprep.subr.bf16.mxu1 %v976_v0  ;;  %467 = vmatprep.subr.bf16.mxu0 %v887_v23 }
  0x46   : > { %790 = vmatpush3.bf16.msra.mxu1 %v889_v24  ;;  %468 = vmatpush1.bf16.msra.mxu0 %v890_v25 }
  0x49   : > { %792 = vmatmul.mubr.bf16.vlgmr.msra.gmra.mxu1 %v891_v26  ;;  %486 = vmatmul.mubr.bf16.vlgmr.msra.gmra.mxu0 %v891_v26 }
 0x109   : > { %v530_v34 = vpop.f32.mrf.mxu1  ;;  %v487_v38 = vpop.f32.mrf.mxu0 }
 0x10a   : > { %v531_v37 = vadd.f32 %v530_v34, %v315_v33  ;;  %v488_v42 = vadd.f32 %v487_v38, %v307_v35 }
 0x10b   : > { %v793_v39 = vpop.f32.mrf.mxu1  ;;  %v489_v41 = vpop.f32.mrf.mxu0 }
 0x10c   : > { %v762_v40 = vpack.c.bf16 %v531_v37, %v531_v37  ;;  %v490_v43 = vadd.f32 %v489_v41, %v311_v36 }
 0x10d   : > { %v533_v44 = vpop.f32.mrf.mxu1  ;;  %v491_v46 = vpop.f32.mrf.mxu0 }
 0x10e   : > { %558 = vst [vmem:[%s248_s8 + $0x8] sm:$0xf] %v762_v40  ;;  %v534_v45 = vadd.f32 %v533_v44, %v315_v33  ;;  %v761_v47 = vpack.c.bf16 %v490_v43, %v488_v42  ;;  %v492_v51 = vadd.f32 %v491_v46, %v307_v35 }
 0x10f   : > { %v794_v48 = vpop.f32.mrf.mxu1  ;;  %v493_v50 = vpop.f32.mrf.mxu0 }
 0x110   : > { %v764_v49 = vpack.c.bf16 %v534_v45, %v534_v45  ;;  %557 = vst [vmem:[%s248_s8] sm:$0xff] %v761_v47  ;;  %v494_v52 = vadd.f32 %v493_v50, %v311_v36  ;;  %567 = sbr.rel (!%p1049_p9) target bundleno = 285 (0x11d), region = 40 }
 0x112   : > { %560 = vst [vmem:[%s248_s8 + $0x14] sm:$0xf] %v764_v49  ;;  %v763_v53 = vpack.c.bf16 %v494_v52, %v492_v51 }
 0x114   : > { %559 = vst [vmem:[%s248_s8 + $0xc] sm:$0xff] %v763_v53 }
 0x115   : > { %v754_v56 = vld [vmem:[%s248_s8 + $0x8] sm:$0xf] }
 0x116   : > { %755 = vst [vmem:[%s573_s12 + $0x8] sm:$0xf] %v754_v56 }
 0x117   : > { %v588_v54 = vld [vmem:[%s248_s8] sm:$0xff] }
 0x118   : > { %589 = vst [vmem:[%s573_s12] sm:$0xff] %v588_v54 }
 0x119   : > { %v756_v57 = vld [vmem:[%s248_s8 + $0x14] sm:$0xf] }
 0x11a   : > { %757 = vst [vmem:[%s573_s12 + $0x20] sm:$0xf] %v756_v57 }
 0x11b   : > { %v590_v55 = vld [vmem:[%s248_s8 + $0xc] sm:$0xff] }
 0x11c   : > { %591 = vst [vmem:[%s573_s12 + $0x18] sm:$0xff] %v590_v55 }
 0x11d PF: > { %s16_s17 = sadd.s32 1, %s970_s17   ;;  %s1148_s12 = smov %s954_s13 }
 0x11e   : > { %p13_p11 = scmp.ge.s32.totalorder %s16_s17, 4   ;;  %s1149_s13 = smov %s958_s14 }
 0x11f   : > { %s1150_s14 = smov %s1047_s24  ;;  %s1151_s15 = smov %s966_s16 }
 0x120   : > { %s1152_s16 = smov %s1154_s19  ;;  %15 = sbr.rel (!%p13_p11) target bundleno = 4 (0x4), region = 110 }
 0x125   :  { %619 = vsyncpa [#allocation3], 1 }
 0x126   :  { %621 = vsyncpa [#allocation3 + $0x1], 1 }

// kernel: so2_transformer_forward.15
= control target key start
LH: loop header
LB: loop body
LE: loop exit
PB: predicated region body
PF: predicated region fallthrough
CT: control target
= control target key end

     0   :  { %s745_s12 = smov 0   ;;  %s747_s13 = smov 0   ;;  %s826_s0 = inlined_call_operand.vmem [shape: bf16[16,768], index: 0, kind: input, shape index: {}, may-alias: {0,1,2}]   ;;  %s827_s1 = inlined_call_operand.vmem [shape: bf16[16,768], index: 1, kind: input, shape index: {}, may-alias: {0,1,2}]   ;;  %s828_s2 = inlined_call_operand.vmem [shape: bf16[16,768], index: 2, kind: input, shape index: {}, may-alias: {0,1,2}]   ;;  %s829_s3 = inlined_call_operand.vmem [shape: bf16[16,256], index: 3, kind: output, shape index: {}]  }
   0x1   :  { %s749_s14 = smov 0   ;;  %s751_s15 = smov 0  }
   0x2   :  { %s753_s16 = smov 0  }
   0x3 LB: > { %s35_s17 = sadd.s32 1, %s711_s14  ;;  %s39_s18 = sadd.s32 1, %s715_s15  ;;  %s719_s16 = sphi %s753_s16, %s13_s16   ;;  %s715_s15 = sphi %s751_s15, %s833_s15   ;;  %s711_s14 = sphi %s749_s14, %s832_s14   ;;  %s707_s13 = sphi %s747_s13, %s831_s13   ;;  %s703_s12 = sphi %s745_s12, %s830_s12  }
   0x4   : > { %p37_p0 = scmp.ge.s32.totalorder %s35_s17, 2  ;;  %p603_p1 = scmp.ge.s32.totalorder %s719_s16, 1 }
   0x5   : > { %p222_p2 = scmp.lt.s32.totalorder %s719_s16, 5 }
   0x6   : > { %s835_s17 = smov (%p37_p0, %s35_s17), 0  ;;  %s837_s18 = smov (!%p37_p0, %s39_s18), %s715_s15 }
   0x7   : > { %p223_p3 = pnand %p603_p1, %p222_p2  ;;  %p41_p4 = scmp.ge.s32.totalorder %s837_s18, 2 }
   0x8   : > { %p275_p5 = scmp.lt.s32.totalorder (!%p223_p3), %s707_s13, 1  ;;  %s285_s19 = sadd.s32 (!%p223_p3), 2, %s703_s12 }
   0x9   : > { %s839_s18 = smov (%p41_p4, %s837_s18), 0  ;;  %226 = sbr.rel (%p223_p3) target bundleno = 796 (0x31c), region = 32 }
   0xa   : > { %p288_p6 = scmp.lt.s32.totalorder (!%p223_p3), %s285_s19, 5  ;;  %p277_p7 = scmp.lt.s32.totalorder (!%p223_p3), %s703_s12, 5 }
   0xb   : > { %s297_s5 = sadd.s32 (!%p223_p3), 4, %s703_s12  ;;  %p311_p9 = scmp.lt.s32.totalorder (!%p223_p3), %s703_s12, 1 }
   0xc   : > { %p300_p8 = scmp.lt.s32.totalorder (!%p223_p3), %s297_s5, 5 }
   0xe   : > { %v721_v0 = vmov 0.0   ;;  %vm722_vm0 = vmmov 0   ;;  %s841_s13 = smov (!%p275_p5, %s707_s13), 1  ;;  %s843_s19 = smov (!%p288_p6, %s285_s19), 5  ;;  %vm323_vm1 = vcmask 7168   ;;  %v723_v3 = vmov -inf  }
   0xf   : > { %616 = vmatprep.subr.bf16.mxu0 %v721_v0  ;;  %618 = vmatprep.mubr.msk.bf16.mxu0 %vm722_vm0, %v721_v0  ;;  %s782_s20 = smul.u32 6, %s841_s13  ;;  %324 = vst.msk [vmem:[#allocation2] sm:$0xff] %vm323_vm1, %v723_v3  ;;  %325 = vst.msk [vmem:[#allocation3] sm:$0xff] %vm323_vm1, %v721_v0  ;;  %vm370_vm2 = vcmask 64512   ;;  %v724_v9 = vmov 0   ;;  %s845_s5 = smov (!%p300_p8, %s297_s5), 5 }
  0x10   : > { %622 = vmatprep.subr.bf16.mxu1 %v721_v0  ;;  %624 = vmatprep.mubr.msk.bf16.mxu1 %vm722_vm0, %v721_v0  ;;  %s278_s21 = scalar_select %p277_p7, %s703_s12, 5  ;;  %vm406_vm3 = vcmask 1043456  }
  0x11   : > { %s291_s22 = sadd.s32 %s782_s20, %s843_s19  ;;  %673 = vset.pattern.permute.xlu0 %v724_v9  ;;  %674 = vset.pattern.permute.xlu1 %v724_v9  ;;  %s303_s6 = sadd.s32 %s782_s20, %s845_s5 }
  0x12   : > { %s605_s23 = sshll.u32 %s291_s22, 2  ;;  %s280_s24 = sadd.s32 %s782_s20, %s278_s21 }
  0x13   : > { %s293_s27 = scalar_lea.vmem %s827_s1, %s605_s23  ;;  %s604_s28 = sshll.u32 %s280_s24, 2 }
  0x14   : > { %v328_v1 = vld [vmem:[%s293_s27] sm:$0xf]  ;;  %s282_s4 = scalar_lea.vmem %s826_s0, %s604_s28  ;;  %s606_s7 = sshll.u32 %s303_s6, 2 }
  0x15   : > { %617 = vmatpush3.bf16.xpose.msra.mxu0 %v328_v1  ;;  %v327_v2 = vld [vmem:[%s282_s4] sm:$0xf]  ;;  %s305_s10 = scalar_lea.vmem %s828_s2, %s606_s7  ;;  %s847_s12 = smov (!%p311_p9, %s703_s12), 1 }
  0x16   : > { %v369_v10 = vld [vmem:[#allocation2] sm:$0xff]  ;;  %v386_v24 = vld [vmem:[#allocation3] sm:$0xff]  ;;  %s607_s11 = sshll.u32 %s841_s13, 1 }
  0x17   : > { %v402_v14 = vld [vmem:[%s305_s10] sm:$0xf]  ;;  %s314_s19 = sadd.s32 %s607_s11, %s847_s12 }
  0x18   : > { %v408_v15 = vsel %vm406_vm3, %v402_v14, 0  ;;  %s608_s20 = sshll.u32 %s314_s19, 2 }
  0x19   : > { %623 = vmatpush3.bf16.msra.mxu1 %v408_v15  ;;  %s316_s23 = scalar_lea.vmem %s829_s3, %s608_s20 }
  0x1c   : > { %619 = vmatmul.mubr.bf16.vlgmr.msra.gmra.mxu0 %v327_v2 }
  0xdc   : > { %v363_v4 = vpop.f32.mrf.mxu0 }
  0xdd   : > { %v371_v5 = vsel %vm370_vm2, %v363_v4, -inf }
  0xde   : > { %372 = vmax.xlane.f32.xlu0 %v371_v5  ;;  %v620_v6 = vpop.f32.mrf.mxu0 }
  0xe0   : > { %v366_v7 = vpop.f32.mrf.mxu0 }
  0xe2   : > { %v621_v8 = vpop.f32.mrf.mxu0 }
 0x167   : > { %v373_v11 = vpop.xlane.xlu0 %372 }
 0x168   : > { %v374_v12 = vmax.f32 %v369_v10, %v373_v11 }
 0x16a   : > { %v375_v13 = vsub.f32 %v369_v10, %v374_v12  ;;  %452 = vst.msk [vmem:[#allocation2] sm:$0xff] %vm323_vm1, %v374_v12  ;;  %380 = vperm.xlu0 %673, %v374_v12  }
 0x16c   : > { %v376_v20 = vmul.f32 1.442695, %v375_v13 }
 0x1e5   : > { %v381_v16 = vpop.permute.xlu0 %380 }
 0x1e6   : > { %v383_v17 = vsub.f32 %v363_v4, %v381_v16 }
 0x1e8   : > { %v384_v18 = vmul.f32 1.442695, %v383_v17 }
 0x1ea   : > { %675 = vpow2.f32 %v384_v18 }
 0x1eb   : > { %677 = vpow2.f32 %v376_v20 }
 0x1f7   : > { %v676_v19 = vpop.eup %675 }
 0x1f8   : > { %v388_v21 = vsel %vm370_vm2, %v676_v19, 0.0  ;;  %v401_v22 = vpack.c.bf16 %v676_v19, %v676_v19  ;;  %v678_v23 = vpop.eup %677 }
 0x1f9   : > { %389 = vadd.xlane.f32.xlu1 %v388_v21  ;;  %v387_v25 = vmul.f32 %v678_v23, %v386_v24 }
 0x1fa   : > { %625 = vmatmul.mubr.msk.bf16.vlgmr.msra.gmra.mxu1 %vm370_vm2, %v401_v22 }
 0x20a   : > { %397 = vperm.xlu1 %674, %v678_v23  }
 0x282   : > { %v390_v26 = vpop.xlane.xlu1 %389 }
 0x283   : > { %v391_v27 = vadd.f32 %v390_v26, %v387_v25 }
 0x285   : > { %393 = vst.msk [vmem:[#allocation3] sm:$0xff] %vm323_vm1, %v391_v27 }
 0x286   : > { %v398_v34 = vpop.permute.xlu1 %397 }
 0x287   : > { %v400_v35 = vmul.f32 0.0, %v398_v34 }
 0x28c   : > { %v456_v28 = vld [vmem:[#allocation3] sm:$0xff] }
 0x28d   : > { %679 = vrcp.f32 %v456_v28 }
 0x29a   : > { %v680_v29 = vpop.eup %679 }
 0x29b   : > { %461 = vperm.xlu1 %674, %v680_v29  }
 0x2ba   : > { %v444_v30 = vpop.f32.mrf.mxu1 }
 0x2bb   : > { %v450_v36 = vadd.f32 %v444_v30, %v400_v35 }
 0x2bc   : > { %v626_v31 = vpop.f32.mrf.mxu1 }
 0x2be   : > { %v447_v32 = vpop.f32.mrf.mxu1 }
 0x2c0   : > { %v627_v33 = vpop.f32.mrf.mxu1 }
 0x316   : > { %v462_v37 = vpop.permute.xlu1 %461 }
 0x317   : > { %v464_v38 = vmul.f32 %v462_v37, %v450_v36 }
 0x319   : > { %v465_v39 = vpack.c.bf16 %v464_v38, %v464_v38 }
 0x31b   : > { %466 = vst [vmem:[%s316_s23] sm:$0xf] %v465_v39 }
 0x31c PF: > { %s13_s16 = sadd.s32 1, %s719_s16   ;;  %s830_s12 = smov %s711_s14 }
 0x31d   : > { %p10_p10 = scmp.ge.s32.totalorder %s13_s16, 6   ;;  %s831_s13 = smov %s715_s15 }
 0x31e   : > { %s832_s14 = smov %s835_s17  ;;  %s833_s15 = smov %s839_s18 }
 0x31f   :  { %12 = sbr.rel (!%p10_p10) target bundleno = 3 (0x3), region = 76 }

// kernel: so2_transformer_forward.18
= control target key start
LH: loop header
LB: loop body
LE: loop exit
PB: predicated region body
PF: predicated region fallthrough
CT: control target
= control target key end

     0   :  { %s682_s15 = smov 0   ;;  %s684_s16 = smov 0   ;;  %s749_s0 = inlined_call_operand.vmem [shape: bf16[16,128], index: 0, kind: input, shape index: {}]   ;;  %s750_s1 = inlined_call_operand.vmem [shape: bf16[128,128], index: 1, kind: input, shape index: {}]   ;;  %s751_s2 = inlined_call_operand.vmem [shape: f32[1,128], index: 2, kind: input, shape index: {}]   ;;  %s752_s3 = inlined_call_operand.vmem [shape: bf16[16,128], index: 3, kind: input, shape index: {}]   ;;  %s753_s4 = inlined_call_operand.vmem [shape: bf16[16,128], index: 4, kind: output, shape index: {}]  }
   0x1   :  { %s686_s17 = smov 0  }
   0x2 LB: > { %s33_s18 = sadd.s32 1, %s649_s16  ;;  %p553_p0 = scmp.ge.s32.totalorder %s653_s17, 1  ;;  %s653_s17 = sphi %s686_s17, %s14_s17   ;;  %s649_s16 = sphi %s684_s16, %s755_s16   ;;  %s645_s15 = sphi %s682_s15, %s754_s15  }
   0x3   : > { %p35_p1 = scmp.ge.s32.totalorder %s33_s18, 2  ;;  %p225_p2 = scmp.lt.s32.totalorder %s653_s17, 3 }
   0x5   : > { %s757_s18 = smov (%p35_p1, %s33_s18), 0  ;;  %p226_p3 = pnand %p553_p0, %p225_p2 }
   0x6   : > { %p273_p4 = scmp.lt.s32.totalorder (!%p226_p3), %s645_s15, 1 }
   0x7   : > { %229 = sbr.rel (%p226_p3) target bundleno = 245 (0xf5), region = 36 }
   0xc   : > { %v623_v0 = vld [vmem:[%s750_s1 + $0x38] sm:$0xff]   ;;  %v655_v1 = vmov 0.0   ;;  %v624_v2 = vld [vmem:[%s750_s1 + $0x30] sm:$0xff]   ;;  %vm656_vm0 = vmmov 0   ;;  %v625_v3 = vld [vmem:[%s750_s1 + $0x28] sm:$0xff]   ;;  %s759_s15 = smov (!%p273_p4, %s645_s15), 1 }
   0xd   : > { %577 = vmatprep.subr.bf16.mxu0 %v655_v1  ;;  %593 = vmatprep.mubr.msk.bf16.mxu0 %vm656_vm0, %v655_v1  ;;  %v626_v4 = vld [vmem:[%s750_s1 + $0x20] sm:$0xff]   ;;  %v627_v5 = vld [vmem:[%s750_s1 + $0x18] sm:$0xff]   ;;  %v628_v6 = vld [vmem:[%s750_s1 + $0x10] sm:$0xff]   ;;  %s554_s7 = sshll.u32 %s759_s15, 2 }
   0xe   : > { %578 = vmatpush3.bf16.msra.mxu0 %v623_v0  ;;  %v629_v7 = vld [vmem:[%s750_s1 + $0x8] sm:$0xff]   ;;  %v630_v8 = vld [vmem:[%s750_s1] sm:$0xff]   ;;  %s279_s12 = scalar_lea.vmem %s749_s0, %s554_s7  ;;  %s298_s19 = scalar_lea.vmem %s752_s3, %s554_s7 }
   0xf   : > { %579 = vmatprep.subr.bf16.mxu0 %v655_v1  ;;  %v307_v9 = vld [vmem:[%s279_s12] sm:$0xf]  ;;  %s305_s23 = scalar_lea.vmem %s753_s4, %s554_s7 }
  0x10   : > { %v419_v10 = vld [vmem:[%s298_s19] sm:$0xf] }
  0x11   : > { %v557_v11 = vld [vmem:[%s751_s2] ss:$0 sm:$0xff]  ;;  %v420_v12 = vunpack.c.l.bf16 %v419_v10 }
  0x12   : > { %580 = vmatpush3.bf16.msra.mxu0 %v624_v2 }
  0x13   : > { %581 = vmatprep.subr.bf16.mxu0 %v655_v1 }
  0x16   : > { %582 = vmatpush3.bf16.msra.mxu0 %v625_v3 }
  0x17   : > { %583 = vmatprep.subr.bf16.mxu0 %v655_v1 }
  0x1a   : > { %584 = vmatpush3.bf16.msra.mxu0 %v626_v4 }
  0x1b   : > { %585 = vmatprep.subr.bf16.mxu0 %v655_v1 }
  0x1e   : > { %586 = vmatpush3.bf16.msra.mxu0 %v627_v5 }
  0x1f   : > { %587 = vmatprep.subr.bf16.mxu0 %v655_v1 }
  0x22   : > { %588 = vmatpush3.bf16.msra.mxu0 %v628_v6 }
  0x23   : > { %589 = vmatprep.subr.bf16.mxu0 %v655_v1 }
  0x26   : > { %590 = vmatpush3.bf16.msra.mxu0 %v629_v7 }
  0x27   : > { %591 = vmatprep.subr.bf16.mxu0 %v655_v1 }
  0x2a   : > { %592 = vmatpush3.bf16.msra.mxu0 %v630_v8 }
  0x2d   : > { %594 = vmatmul.mubr.bf16.vlgmr.msra.gmra.mxu0 %v307_v9 }
  0xed   : > { %v413_v13 = vpop.f32.mrf.mxu0 }
  0xee   : > { %v414_v14 = vadd.f32 %v557_v11, %v413_v13 }
  0xef   : > { %v595_v15 = vpop.f32.mrf.mxu0 }
  0xf0   : > { %v421_v16 = vadd.f32 %v420_v12, %v414_v14 }
  0xf1   : > { %v416_v17 = vpop.f32.mrf.mxu0 }
  0xf2   : > { %v422_v18 = vpack.c.bf16 %v421_v16, %v421_v16 }
  0xf3   : > { %v596_v19 = vpop.f32.mrf.mxu0 }
  0xf4   : > { %423 = vst [vmem:[%s305_s23] sm:$0xf] %v422_v18 }
  0xf5 PF: > { %s14_s17 = sadd.s32 1, %s653_s17   ;;  %s754_s15 = smov %s649_s16 }
  0xf6   : > { %p11_p5 = scmp.ge.s32.totalorder %s14_s17, 4   ;;  %s755_s16 = smov %s757_s18 }
  0xf8   :  { %13 = sbr.rel (!%p11_p5) target bundleno = 2 (0x2), region = 75 }

// kernel: so2_transformer_forward.25
= control target key start
LH: loop header
LB: loop body
LE: loop exit
PB: predicated region body
PF: predicated region fallthrough
CT: control target
= control target key end

     0   :  { %s603_s12 = smov 0   ;;  %s605_s13 = smov 0   ;;  %s667_s0 = inlined_call_operand.vmem [shape: bf16[16,128], index: 0, kind: input, shape index: {}]   ;;  %s668_s1 = inlined_call_operand.vmem [shape: bf16[128,128], index: 1, kind: input, shape index: {}]   ;;  %s669_s2 = inlined_call_operand.vmem [shape: f32[1,128], index: 2, kind: input, shape index: {}]   ;;  %s670_s3 = inlined_call_operand.vmem [shape: bf16[16,128], index: 3, kind: output, shape index: {}]  }
   0x1   :  { %s607_s14 = smov 0  }
   0x2 LB: > { %s32_s15 = sadd.s32 1, %s575_s13  ;;  %p480_p0 = scmp.ge.s32.totalorder %s579_s14, 1  ;;  %s579_s14 = sphi %s607_s14, %s13_s14   ;;  %s575_s13 = sphi %s605_s13, %s672_s13   ;;  %s571_s12 = sphi %s603_s12, %s671_s12  }
   0x3   : > { %p34_p1 = scmp.ge.s32.totalorder %s32_s15, 2  ;;  %p186_p2 = scmp.lt.s32.totalorder %s579_s14, 3 }
   0x5   : > { %s674_s15 = smov (%p34_p1, %s32_s15), 0  ;;  %p187_p3 = pnand %p480_p0, %p186_p2 }
   0x6   : > { %p225_p4 = scmp.lt.s32.totalorder (!%p187_p3), %s571_s12, 1 }
   0x7   : > { %190 = sbr.rel (%p187_p3) target bundleno = 244 (0xf4), region = 32 }
   0xc   : > { %v549_v0 = vld [vmem:[%s668_s1 + $0x38] sm:$0xff]   ;;  %v581_v1 = vmov 0.0   ;;  %v550_v2 = vld [vmem:[%s668_s1 + $0x30] sm:$0xff]   ;;  %vm582_vm0 = vmmov 0   ;;  %v551_v3 = vld [vmem:[%s668_s1 + $0x28] sm:$0xff]   ;;  %s676_s12 = smov (!%p225_p4, %s571_s12), 1 }
   0xd   : > { %503 = vmatprep.subr.bf16.mxu0 %v581_v1  ;;  %519 = vmatprep.mubr.msk.bf16.mxu0 %vm582_vm0, %v581_v1  ;;  %v552_v4 = vld [vmem:[%s668_s1 + $0x20] sm:$0xff]   ;;  %v553_v5 = vld [vmem:[%s668_s1 + $0x18] sm:$0xff]   ;;  %v554_v6 = vld [vmem:[%s668_s1 + $0x10] sm:$0xff]   ;;  %s481_s30 = sshll.u32 %s676_s12, 2 }
   0xe   : > { %504 = vmatpush3.bf16.msra.mxu0 %v549_v0  ;;  %v555_v7 = vld [vmem:[%s668_s1 + $0x8] sm:$0xff]   ;;  %v556_v8 = vld [vmem:[%s668_s1] sm:$0xff]   ;;  %s231_s8 = scalar_lea.vmem %s667_s0, %s481_s30  ;;  %s250_s16 = scalar_lea.vmem %s670_s3, %s481_s30 }
   0xf   : > { %505 = vmatprep.subr.bf16.mxu0 %v581_v1  ;;  %v252_v9 = vld [vmem:[%s231_s8] sm:$0xf] }
  0x10   : > { %v483_v10 = vld [vmem:[%s669_s2] ss:$0 sm:$0xff] }
  0x12   : > { %506 = vmatpush3.bf16.msra.mxu0 %v550_v2 }
  0x13   : > { %507 = vmatprep.subr.bf16.mxu0 %v581_v1 }
  0x16   : > { %508 = vmatpush3.bf16.msra.mxu0 %v551_v3 }
  0x17   : > { %509 = vmatprep.subr.bf16.mxu0 %v581_v1 }
  0x1a   : > { %510 = vmatpush3.bf16.msra.mxu0 %v552_v4 }
  0x1b   : > { %511 = vmatprep.subr.bf16.mxu0 %v581_v1 }
  0x1e   : > { %512 = vmatpush3.bf16.msra.mxu0 %v553_v5 }
  0x1f   : > { %513 = vmatprep.subr.bf16.mxu0 %v581_v1 }
  0x22   : > { %514 = vmatpush3.bf16.msra.mxu0 %v554_v6 }
  0x23   : > { %515 = vmatprep.subr.bf16.mxu0 %v581_v1 }
  0x26   : > { %516 = vmatpush3.bf16.msra.mxu0 %v555_v7 }
  0x27   : > { %517 = vmatprep.subr.bf16.mxu0 %v581_v1 }
  0x2a   : > { %518 = vmatpush3.bf16.msra.mxu0 %v556_v8 }
  0x2d   : > { %520 = vmatmul.mubr.bf16.vlgmr.msra.gmra.mxu0 %v252_v9 }
  0xed   : > { %v358_v11 = vpop.f32.mrf.mxu0 }
  0xee   : > { %v359_v12 = vadd.f32 %v483_v10, %v358_v11 }
  0xef   : > { %v521_v13 = vpop.f32.mrf.mxu0 }
  0xf0   : > { %v364_v14 = vpack.c.bf16 %v359_v12, %v359_v12 }
  0xf1   : > { %v361_v15 = vpop.f32.mrf.mxu0 }
  0xf2   : > { %365 = vst [vmem:[%s250_s16] sm:$0xf] %v364_v14 }
  0xf3   : > { %v522_v16 = vpop.f32.mrf.mxu0 }
  0xf4 PF: > { %s13_s14 = sadd.s32 1, %s579_s14   ;;  %s671_s12 = smov %s575_s13 }
  0xf5   : > { %p10_p5 = scmp.ge.s32.totalorder %s13_s14, 4   ;;  %s672_s13 = smov %s674_s15 }
  0xf7   :  { %12 = sbr.rel (!%p10_p5) target bundleno = 2 (0x2), region = 68 }

// kernel: so2_transformer_forward.19
= control target key start
LH: loop header
LB: loop body
LE: loop exit
PB: predicated region body
PF: predicated region fallthrough
CT: control target
= control target key end

     0   :  { %s1040_s12 = smov 0   ;;  %s1042_s13 = smov 0   ;;  %s1217_s0 = inlined_call_operand.vmem [shape: bf16[16,128], index: 0, kind: input, shape index: {}]   ;;  %s1218_s1 = inlined_call_operand.vmem [shape: bf16[128,768], index: 1, kind: input, shape index: {}]   ;;  %s1219_s2 = inlined_call_operand.vmem [shape: f32[1,768], index: 2, kind: input, shape index: {}]   ;;  %s1220_s3 = inlined_call_operand.vmem [shape: bf16[16,768], index: 3, kind: output, shape index: {}]  }
   0x1   :  { %s1044_s14 = smov 0   ;;  %s1046_s15 = smov 0  }
   0x2   :  { %s1048_s16 = smov 0  }
   0x3 LB: > { %s28_s17 = sadd.s32 1, %s1011_s15  ;;  %s788_s18 = sadd.s32 4294967295, %s1015_s16   ;;  %s1015_s16 = sphi %s1048_s16, %s13_s16   ;;  %s1011_s15 = sphi %s1046_s15, %s1225_s15   ;;  %s1007_s14 = sphi %s1044_s14, %s1224_s14   ;;  %s1003_s13 = sphi %s1042_s13, %s1223_s13   ;;  %s999_s12 = sphi %s1040_s12, %s1222_s12  }
   0x4   : > { %p30_p0 = scmp.ge.s32.totalorder %s28_s17, 2  ;;  %p76_p1 = scmp.ne.s32.totalorder %s1003_s13, %s999_s12 }
   0x5   : > { %p77_p2 = scmp.eq.s32.totalorder %s1015_s16, 0  ;;  %p134_p4 = scmp.eq.s32.totalorder %s788_s18, 1 }
   0x6   : > { %s1227_s17 = smov (%p30_p0, %s28_s17), 0  ;;  %s69_s20 = sadd.s32 1, %s1003_s13 }
   0x7   : > { %p78_p3 = por %p77_p2, %p76_p1  ;;  %s65_s19 = ssub.s32 %s1011_s15, %s1227_s17 }
   0x8   : > { %p67_p5 = scmp.eq.s32.totalorder %s65_s19, 0  ;;  %p1075_p6 = por %p134_p4, %p76_p1 }
   0x9   : > { %p792_p7 = scmp.ge.s32.totalorder %s1015_s16, 2 }
   0xa   : > { %s1080_s22 = scalar_select %p67_p5, %s1003_s13, %s69_s20  }
   0xb   : > { %168 = sbr.rel (%p792_p7) target bundleno = 39 (0x27), region = 20 }
  0x10   : > { %171 = sbr.rel (!%p78_p3) target bundleno = 39 (0x27), region = 24  ;;  %s173_s23 = sand.u32 (%p78_p3), 1, %s1003_s13  }
  0x11   : > { %s863_s24 = smul.u32 (%p78_p3), 12, %s1011_s15 }
  0x12   : > { %s898_s25 = smul.u32 (%p78_p3), 192, %s173_s23 }
  0x13   : > { %s1088_s28 = scalar_lea.vmem (%p78_p3), %s1218_s1, %s863_s24 }
  0x14   : > { %v196_v0 = vld [vmem:[%s1088_s28] sm:$0xff] (%p78_p3)  ;;  %v198_v1 = vld [vmem:[%s1088_s28 + $0x18] sm:$0xff] (%p78_p3)  ;;  %v200_v2 = vld [vmem:[%s1088_s28 + $0x30] sm:$0xff] (%p78_p3)  ;;  %s1093_s29 = scalar_lea.vmem (%p78_p3), [#allocation2], %s898_s25 }
  0x15   : > { %197 = vst [vmem:[%s1093_s29] sm:$0xff] %v196_v0  ;;  %199 = vst [vmem:[%s1093_s29 + $0xc] sm:$0xff] %v198_v1  ;;  %v202_v3 = vld [vmem:[%s1088_s28 + $0x48] sm:$0xff]  ;;  %v204_v4 = vld [vmem:[%s1088_s28 + $0x60] sm:$0xff] }
  0x16   : > { %201 = vst [vmem:[%s1093_s29 + $0x18] sm:$0xff] %v200_v2  ;;  %v206_v5 = vld [vmem:[%s1088_s28 + $0x78] sm:$0xff]  ;;  %203 = vst [vmem:[%s1093_s29 + $0x24] sm:$0xff] %v202_v3  ;;  %v208_v6 = vld [vmem:[%s1088_s28 + $0x90] sm:$0xff] }
  0x17   : > { %205 = vst [vmem:[%s1093_s29 + $0x30] sm:$0xff] %v204_v4  ;;  %207 = vst [vmem:[%s1093_s29 + $0x3c] sm:$0xff] %v206_v5  ;;  %v210_v7 = vld [vmem:[%s1088_s28 + $0xa8] sm:$0xff]  ;;  %v212_v8 = vld [vmem:[%s1088_s28 + $0xc0] sm:$0xff] }
  0x18   : > { %209 = vst [vmem:[%s1093_s29 + $0x48] sm:$0xff] %v208_v6  ;;  %211 = vst [vmem:[%s1093_s29 + $0x54] sm:$0xff] %v210_v7  ;;  %v214_v9 = vld [vmem:[%s1088_s28 + $0xd8] sm:$0xff]  ;;  %v216_v10 = vld [vmem:[%s1088_s28 + $0xf0] sm:$0xff] }
  0x19   : > { %213 = vst [vmem:[%s1093_s29 + $0x60] sm:$0xff] %v212_v8  ;;  %v218_v11 = vld [vmem:[%s1088_s28 + $0x108] sm:$0xff]  ;;  %215 = vst [vmem:[%s1093_s29 + $0x6c] sm:$0xff] %v214_v9  ;;  %v220_v12 = vld [vmem:[%s1088_s28 + $0x120] sm:$0xff] }
  0x1a   : > { %217 = vst [vmem:[%s1093_s29 + $0x78] sm:$0xff] %v216_v10  ;;  %219 = vst [vmem:[%s1093_s29 + $0x84] sm:$0xff] %v218_v11  ;;  %v222_v13 = vld [vmem:[%s1088_s28 + $0x138] sm:$0xff]  ;;  %v224_v14 = vld [vmem:[%s1088_s28 + $0x150] sm:$0xff] }
  0x1b   : > { %221 = vst [vmem:[%s1093_s29 + $0x90] sm:$0xff] %v220_v12  ;;  %223 = vst [vmem:[%s1093_s29 + $0x9c] sm:$0xff] %v222_v13  ;;  %v226_v15 = vld [vmem:[%s1088_s28 + $0x168] sm:$0xff]  ;;  %v796_v17 = vld [vmem:[%s1088_s28 + $0x20] sm:$0xf] }
  0x1c   : > { %225 = vst [vmem:[%s1093_s29 + $0xa8] sm:$0xff] %v224_v14  ;;  %v794_v16 = vld [vmem:[%s1088_s28 + $0x8] sm:$0xf]  ;;  %227 = vst [vmem:[%s1093_s29 + $0xb4] sm:$0xff] %v226_v15  ;;  %v798_v18 = vld [vmem:[%s1088_s28 + $0x38] sm:$0xf] }
  0x1d   : > { %795 = vst [vmem:[%s1093_s29 + $0x8] sm:$0xf] %v794_v16  ;;  %797 = vst [vmem:[%s1093_s29 + $0x14] sm:$0xf] %v796_v17  ;;  %v800_v19 = vld [vmem:[%s1088_s28 + $0x50] sm:$0xf] }
  0x1e   : > { %v802_v20 = vld [vmem:[%s1088_s28 + $0x68] sm:$0xf]  ;;  %799 = vst [vmem:[%s1093_s29 + $0x20] sm:$0xf] %v798_v18  ;;  %801 = vst [vmem:[%s1093_s29 + $0x2c] sm:$0xf] %v800_v19 }
  0x1f   : > { %803 = vst [vmem:[%s1093_s29 + $0x38] sm:$0xf] %v802_v20  ;;  %v804_v21 = vld [vmem:[%s1088_s28 + $0x80] sm:$0xf]  ;;  %v806_v22 = vld [vmem:[%s1088_s28 + $0x98] sm:$0xf] }
  0x20   : > { %v808_v23 = vld [vmem:[%s1088_s28 + $0xb0] sm:$0xf]  ;;  %805 = vst [vmem:[%s1093_s29 + $0x44] sm:$0xf] %v804_v21  ;;  %807 = vst [vmem:[%s1093_s29 + $0x50] sm:$0xf] %v806_v22 }
  0x21   : > { %809 = vst [vmem:[%s1093_s29 + $0x5c] sm:$0xf] %v808_v23  ;;  %v810_v24 = vld [vmem:[%s1088_s28 + $0xc8] sm:$0xf]  ;;  %v812_v25 = vld [vmem:[%s1088_s28 + $0xe0] sm:$0xf] }
  0x22   : > { %v814_v26 = vld [vmem:[%s1088_s28 + $0xf8] sm:$0xf]  ;;  %811 = vst [vmem:[%s1093_s29 + $0x68] sm:$0xf] %v810_v24  ;;  %813 = vst [vmem:[%s1093_s29 + $0x74] sm:$0xf] %v812_v25 }
  0x23   : > { %815 = vst [vmem:[%s1093_s29 + $0x80] sm:$0xf] %v814_v26  ;;  %v816_v27 = vld [vmem:[%s1088_s28 + $0x110] sm:$0xf]  ;;  %v818_v28 = vld [vmem:[%s1088_s28 + $0x128] sm:$0xf] }
  0x24   : > { %v820_v29 = vld [vmem:[%s1088_s28 + $0x140] sm:$0xf]  ;;  %817 = vst [vmem:[%s1093_s29 + $0x8c] sm:$0xf] %v816_v27  ;;  %819 = vst [vmem:[%s1093_s29 + $0x98] sm:$0xf] %v818_v28 }
  0x25   : > { %821 = vst [vmem:[%s1093_s29 + $0xa4] sm:$0xf] %v820_v29  ;;  %v822_v30 = vld [vmem:[%s1088_s28 + $0x158] sm:$0xf]  ;;  %v824_v31 = vld [vmem:[%s1088_s28 + $0x170] sm:$0xf] }
  0x26   : > { %823 = vst [vmem:[%s1093_s29 + $0xb0] sm:$0xf] %v822_v30  ;;  %825 = vst [vmem:[%s1093_s29 + $0xbc] sm:$0xf] %v824_v31 }
  0x27 PF: > { %p826_p8 = scmp.ge.s32.totalorder %s1015_s16, 1  ;;  %p280_p9 = scmp.lt.s32.totalorder %s1015_s16, 3 }
  0x29   : > { %p281_p10 = pnand %p826_p8, %p280_p9 }
  0x2a   : > { %s287_s30 = sand.u32 (!%p281_p10), 1, %s999_s12   ;;  %s332_s8 = smul.u32 (!%p281_p10), 3, %s1007_s14 }
  0x2b   : > { %284 = sbr.rel (%p281_p10) target bundleno = 294 (0x126), region = 54 }
  0x2c   : > { %s899_s4 = smul.u32 (!%p281_p10), 192, %s287_s30  ;;  %p333_p11 = scmp.lt.s32.totalorder (!%p281_p10), %s332_s8, 5 }
  0x2d   : > { %s900_s18 = smul.u32 (!%p281_p10), 24, %s287_s30 }
  0x2e   : > { %s1161_s5 = scalar_lea.vmem (!%p281_p10), [#allocation2], %s899_s4 }
  0x2f   : > { %s320_s19 = scalar_lea.vmem (!%p281_p10), [#allocation3], %s900_s18 }
  0x30   : > { %v1017_v32 = vmov 0.0   ;;  %vm1018_vm0 = vmmov 0   ;;  %v1019_v33 = vmov 0   ;;  %v944_v34 = vld [vmem:[%s1161_s5 + $0xac] ss:$12 sps:$4 sm:$0xff]   ;;  %v976_v58 = vld [vmem:[%s1217_s0] sm:$0xff]   ;;  %v376_v59 = vlaneseq }
  0x31   : > { %878 = vmatprep.subr.bf16.mxu1 %v1017_v32  ;;  %894 = vmatprep.mubr.msk.bf16.mxu1 %vm1018_vm0, %v1017_v32  ;;  %v946_v35 = vld [vmem:[%s1161_s5 + $0xb0] ss:$12 sps:$4 sm:$0xff]   ;;  %v947_v36 = vld [vmem:[%s1161_s5 + $0xa8] ss:$12 sps:$4 sm:$0xff]   ;;  %v950_v38 = vld [vmem:[%s1161_s5 + $0x98] ss:$12 sps:$4 sm:$0xff]  }
  0x32   : > { %557 = vmatprep.mubr.bf16.mxu0 %v1019_v33  ;;  %525 = vmatprep.subr.bf16.mxu0 %v944_v34  ;;  %v948_v37 = vld [vmem:[%s1161_s5 + $0x94] ss:$12 sps:$4 sm:$0xff]   ;;  %v951_v39 = vld [vmem:[%s1161_s5 + $0x90] ss:$12 sps:$4 sm:$0xff]   ;;  %v955_v42 = vld [vmem:[%s1161_s5 + $0x78] ss:$12 sps:$4 sm:$0xff]  }
  0x33   : > { %879 = vmatpush3.bf16.msra.mxu1 %v946_v35  ;;  %526 = vmatpush1.bf16.msra.mxu0 %v947_v36  ;;  %v952_v40 = vld [vmem:[%s1161_s5 + $0x7c] ss:$12 sps:$4 sm:$0xff]   ;;  %v954_v41 = vld [vmem:[%s1161_s5 + $0x80] ss:$12 sps:$4 sm:$0xff]   ;;  %v956_v43 = vld [vmem:[%s1161_s5 + $0x64] ss:$12 sps:$4 sm:$0xff]  }
  0x34   : > { %880 = vmatprep.subr.bf16.mxu1 %v1017_v32  ;;  %527 = vmatprep.subr.bf16.mxu0 %v948_v37  ;;  %v958_v44 = vld [vmem:[%s1161_s5 + $0x68] ss:$12 sps:$4 sm:$0xff]   ;;  %v959_v45 = vld [vmem:[%s1161_s5 + $0x60] ss:$12 sps:$4 sm:$0xff]   ;;  %v962_v47 = vld [vmem:[%s1161_s5 + $0x50] ss:$12 sps:$4 sm:$0xff]  }
  0x35   : > { %v960_v46 = vld [vmem:[%s1161_s5 + $0x4c] ss:$12 sps:$4 sm:$0xff]   ;;  %v963_v48 = vld [vmem:[%s1161_s5 + $0x48] ss:$12 sps:$4 sm:$0xff]   ;;  %v967_v51 = vld [vmem:[%s1161_s5 + $0x30] ss:$12 sps:$4 sm:$0xff]  }
  0x36   : > { %v964_v49 = vld [vmem:[%s1161_s5 + $0x34] ss:$12 sps:$4 sm:$0xff]   ;;  %v966_v50 = vld [vmem:[%s1161_s5 + $0x38] ss:$12 sps:$4 sm:$0xff]   ;;  %v968_v52 = vld [vmem:[%s1161_s5 + $0x1c] ss:$12 sps:$4 sm:$0xff]  }
  0x37   : > { %881 = vmatpush3.bf16.msra.mxu1 %v950_v38  ;;  %528 = vmatpush1.bf16.msra.mxu0 %v951_v39  ;;  %v970_v53 = vld [vmem:[%s1161_s5 + $0x20] ss:$12 sps:$4 sm:$0xff]   ;;  %v971_v54 = vld [vmem:[%s1161_s5 + $0x18] ss:$12 sps:$4 sm:$0xff]   ;;  %v974_v56 = vld [vmem:[%s1161_s5 + $0x8] ss:$12 sps:$4 sm:$0xff]  }
  0x38   : > { %882 = vmatprep.subr.bf16.mxu1 %v1017_v32  ;;  %529 = vmatprep.subr.bf16.mxu0 %v952_v40  ;;  %v972_v55 = vld [vmem:[%s1161_s5 + $0x4] ss:$12 sps:$4 sm:$0xff]   ;;  %v975_v57 = vld [vmem:[%s1161_s5] ss:$12 sps:$4 sm:$0xff]   ;;  %s1229_s8 = smov (!%p333_p11, %s332_s8), 5  ;;  %v377_v60 = vshrl.u32 %v376_v59, 7 }
  0x39   : > { %s335_s11 = scalar_lea.vmem %s1219_s2, %s1229_s8  ;;  %s868_s12 = smul.u32 (%p1075_p6), 12, %s1007_s14 }
  0x3a   : > { %v386_v61 = vsub.s32 2, %v377_v60  ;;  %v374_v62 = vld [vmem:[%s335_s11] sm:$0x7]  ;;  %v378_v63 = vsub.s32 0, %v377_v60  ;;  %v382_v0 = vsub.s32 1, %v377_v60 }
  0x3b   : > { %883 = vmatpush3.bf16.msra.mxu1 %v954_v41  ;;  %530 = vmatpush1.bf16.msra.mxu0 %v955_v42  ;;  %s645_s24 = scalar_lea.vmem (%p1075_p6), %s1220_s3, %s868_s12 }
  0x3c   : > { %884 = vmatprep.subr.bf16.mxu1 %v1017_v32  ;;  %531 = vmatprep.subr.bf16.mxu0 %v956_v43  ;;  %v387_v1 = vrot.slane %v374_v62, %v386_v61  ;;  %v379_v3 = vrot.slane %v374_v62, %v378_v63  ;;  %v383_v4 = vrot.slane %v374_v62, %v382_v0 }
  0x3f   : > { %885 = vmatpush3.bf16.msra.mxu1 %v958_v44  ;;  %532 = vmatpush1.bf16.msra.mxu0 %v959_v45 }
  0x40   : > { %886 = vmatprep.subr.bf16.mxu1 %v1017_v32  ;;  %533 = vmatprep.subr.bf16.mxu0 %v960_v46 }
  0x43   : > { %887 = vmatpush3.bf16.msra.mxu1 %v962_v47  ;;  %534 = vmatpush1.bf16.msra.mxu0 %v963_v48 }
  0x44   : > { %888 = vmatprep.subr.bf16.mxu1 %v1017_v32  ;;  %535 = vmatprep.subr.bf16.mxu0 %v964_v49 }
  0x47   : > { %889 = vmatpush3.bf16.msra.mxu1 %v966_v50  ;;  %536 = vmatpush1.bf16.msra.mxu0 %v967_v51 }
  0x48   : > { %890 = vmatprep.subr.bf16.mxu1 %v1017_v32  ;;  %537 = vmatprep.subr.bf16.mxu0 %v968_v52 }
  0x4b   : > { %891 = vmatpush3.bf16.msra.mxu1 %v970_v53  ;;  %538 = vmatpush1.bf16.msra.mxu0 %v971_v54 }
  0x4c   : > { %892 = vmatprep.subr.bf16.mxu1 %v1017_v32  ;;  %539 = vmatprep.subr.bf16.mxu0 %v972_v55 }
  0x4f   : > { %893 = vmatpush3.bf16.msra.mxu1 %v974_v56  ;;  %540 = vmatpush1.bf16.msra.mxu0 %v975_v57 }
  0x52   : > { %895 = vmatmul.mubr.bf16.vlgmr.msra.gmra.mxu1 %v976_v58  ;;  %558 = vmatmul.mubr.bf16.vlgmr.msra.gmra.mxu0 %v976_v58 }
 0x112   : > { %v602_v2 = vpop.f32.mrf.mxu1  ;;  %v559_v6 = vpop.f32.mrf.mxu0 }
 0x113   : > { %v603_v5 = vadd.f32 %v602_v2, %v387_v1  ;;  %v560_v10 = vadd.f32 %v559_v6, %v379_v3 }
 0x114   : > { %v896_v7 = vpop.f32.mrf.mxu1  ;;  %v561_v9 = vpop.f32.mrf.mxu0 }
 0x115   : > { %v865_v8 = vpack.c.bf16 %v603_v5, %v603_v5  ;;  %v562_v11 = vadd.f32 %v561_v9, %v383_v4 }
 0x116   : > { %v605_v12 = vpop.f32.mrf.mxu1  ;;  %v563_v14 = vpop.f32.mrf.mxu0 }
 0x117   : > { %630 = vst [vmem:[%s320_s19 + $0x8] sm:$0xf] %v865_v8  ;;  %v606_v13 = vadd.f32 %v605_v12, %v387_v1  ;;  %v864_v15 = vpack.c.bf16 %v562_v11, %v560_v10  ;;  %v564_v19 = vadd.f32 %v563_v14, %v379_v3 }
 0x118   : > { %v897_v16 = vpop.f32.mrf.mxu1  ;;  %v565_v18 = vpop.f32.mrf.mxu0 }
 0x119   : > { %v867_v17 = vpack.c.bf16 %v606_v13, %v606_v13  ;;  %629 = vst [vmem:[%s320_s19] sm:$0xff] %v864_v15  ;;  %v566_v20 = vadd.f32 %v565_v18, %v383_v4  ;;  %639 = sbr.rel (!%p1075_p6) target bundleno = 294 (0x126), region = 62 }
 0x11b   : > { %632 = vst [vmem:[%s320_s19 + $0x14] sm:$0xf] %v867_v17  ;;  %v866_v21 = vpack.c.bf16 %v566_v20, %v564_v19 }
 0x11d   : > { %631 = vst [vmem:[%s320_s19 + $0xc] sm:$0xff] %v866_v21 }
 0x11e   : > { %v857_v24 = vld [vmem:[%s320_s19 + $0x8] sm:$0xf] }
 0x11f   : > { %858 = vst [vmem:[%s645_s24 + $0x8] sm:$0xf] %v857_v24 }
 0x120   : > { %v660_v22 = vld [vmem:[%s320_s19] sm:$0xff] }
 0x121   : > { %661 = vst [vmem:[%s645_s24] sm:$0xff] %v660_v22 }
 0x122   : > { %v859_v25 = vld [vmem:[%s320_s19 + $0x14] sm:$0xf] }
 0x123   : > { %860 = vst [vmem:[%s645_s24 + $0x20] sm:$0xf] %v859_v25 }
 0x124   : > { %v662_v23 = vld [vmem:[%s320_s19 + $0xc] sm:$0xff] }
 0x125   : > { %663 = vst [vmem:[%s645_s24 + $0x18] sm:$0xff] %v662_v23 }
 0x126 PF: > { %s13_s16 = sadd.s32 1, %s1015_s16   ;;  %s1222_s12 = smov %s1003_s13 }
 0x127   : > { %p10_p12 = scmp.ge.s32.totalorder %s13_s16, 4   ;;  %s1223_s13 = smov %s1080_s22 }
 0x128   : > { %s1224_s14 = smov %s1011_s15  ;;  %s1225_s15 = smov %s1227_s17 }
 0x129   :  { %12 = sbr.rel (!%p10_p12) target bundleno = 3 (0x3), region = 137 }

// kernel: so2_transformer_forward.17
= control target key start
LH: loop header
LB: loop body
LE: loop exit
PB: predicated region body
PF: predicated region fallthrough
CT: control target
= control target key end

     0   :  { %s1077_s21 = smov 0   ;;  %s1079_s22 = smov 0   ;;  %s1261_s0 = inlined_call_operand.vmem [shape: bf16[16,128], index: 0, kind: input, shape index: {}]   ;;  %s1262_s1 = inlined_call_operand.vmem [shape: bf16[128,128], index: 1, kind: input, shape index: {}]   ;;  %s1263_s2 = inlined_call_operand.vmem [shape: f32[1,128], index: 2, kind: input, shape index: {}]   ;;  %s1264_s3 = inlined_call_operand.vmem [shape: bf16[128,128], index: 3, kind: input, shape index: {}]   ;;  %s1265_s4 = inlined_call_operand.vmem [shape: f32[1,128], index: 4, kind: input, shape index: {}]   ;;  %s1266_s5 = inlined_call_operand.vmem [shape: f32[128,128], index: 5, kind: input, shape index: {}]   ;;  %s1267_s6 = inlined_call_operand.vmem [shape: bf16[16,128], index: 6, kind: output, shape index: {}]  }
   0x1   :  { %s1081_s23 = smov 0  }
   0x2 LB: > { %s35_s24 = sadd.s32 1, %s1034_s22  ;;  %p836_p0 = scmp.ge.s32.totalorder %s1038_s23, 1  ;;  %s1038_s23 = sphi %s1081_s23, %s16_s23   ;;  %s1034_s22 = sphi %s1079_s22, %s1269_s22   ;;  %s1030_s21 = sphi %s1077_s21, %s1268_s21  }
   0x3   : > { %p37_p1 = scmp.ge.s32.totalorder %s35_s24, 2  ;;  %p281_p2 = scmp.lt.s32.totalorder %s1038_s23, 3 }
   0x5   : > { %s1271_s24 = smov (%p37_p1, %s35_s24), 0  ;;  %p282_p3 = pnand %p836_p0, %p281_p2 }
   0x6   : > { %p335_p4 = scmp.lt.s32.totalorder (!%p282_p3), %s1030_s21, 1 }
   0x7   : > { %285 = sbr.rel (%p282_p3) target bundleno = 470 (0x1d6), region = 44 }
   0xc   : > { %v996_v0 = vld [vmem:[%s1264_s3 + $0x38] sm:$0xff]   ;;  %v1040_v1 = vmov 0.0   ;;  %v997_v2 = vld [vmem:[%s1264_s3 + $0x30] sm:$0xff]   ;;  %vm1041_vm0 = vmmov 0   ;;  %v998_v3 = vld [vmem:[%s1264_s3 + $0x28] sm:$0xff]   ;;  %s1273_s21 = smov (!%p335_p4, %s1030_s21), 1 }
   0xd   : > { %915 = vmatprep.subr.bf16.mxu1 %v1040_v1  ;;  %895 = vmatprep.subr.bf16.mxu0 %v1040_v1  ;;  %v1004_v4 = vld [vmem:[%s1262_s1 + $0x38] sm:$0xff]   ;;  %v999_v5 = vld [vmem:[%s1264_s3 + $0x20] sm:$0xff]   ;;  %v1005_v6 = vld [vmem:[%s1262_s1 + $0x30] sm:$0xff]   ;;  %s837_s29 = sshll.u32 %s1273_s21, 2 }
   0xe   : > { %916 = vmatpush3.bf16.msra.mxu1 %v996_v0  ;;  %931 = vmatprep.mubr.msk.bf16.mxu1 %vm1041_vm0, %v1040_v1  ;;  %v1000_v7 = vld [vmem:[%s1264_s3 + $0x18] sm:$0xff]   ;;  %v1006_v8 = vld [vmem:[%s1262_s1 + $0x28] sm:$0xff]   ;;  %v1001_v9 = vld [vmem:[%s1264_s3 + $0x10] sm:$0xff]   ;;  %s341_s10 = scalar_lea.vmem %s1261_s0, %s837_s29  ;;  %s370_s17 = scalar_lea.vmem %s1267_s6, %s837_s29 }
   0xf   : > { %917 = vmatprep.subr.bf16.mxu1 %v1040_v1  ;;  %911 = vmatprep.mubr.msk.bf16.mxu0 %vm1041_vm0, %v1040_v1  ;;  %v1007_v10 = vld [vmem:[%s1262_s1 + $0x20] sm:$0xff]   ;;  %v1002_v11 = vld [vmem:[%s1264_s3 + $0x8] sm:$0xff]   ;;  %v1008_v12 = vld [vmem:[%s1262_s1 + $0x18] sm:$0xff]  }
  0x10   : > { %896 = vmatpush3.bf16.msra.mxu0 %v1004_v4  ;;  %v1003_v13 = vld [vmem:[%s1264_s3] sm:$0xff]   ;;  %v1009_v14 = vld [vmem:[%s1262_s1 + $0x10] sm:$0xff]   ;;  %v1010_v16 = vld [vmem:[%s1262_s1 + $0x8] sm:$0xff]  }
  0x11   : > { %897 = vmatprep.subr.bf16.mxu0 %v1040_v1  ;;  %v372_v15 = vld [vmem:[%s341_s10] sm:$0xf]  ;;  %v616_v18 = vld [vmem:[%s1266_s5 + $0x78] sm:$0xff]  ;;  %v615_v19 = vld [vmem:[%s1266_s5 + $0x70] sm:$0xff] }
  0x12   : > { %918 = vmatpush3.bf16.msra.mxu1 %v997_v2  ;;  %v1011_v17 = vld [vmem:[%s1262_s1] sm:$0xff]   ;;  %v614_v20 = vld [vmem:[%s1266_s5 + $0x68] sm:$0xff]  ;;  %v612_v22 = vld [vmem:[%s1266_s5 + $0x58] sm:$0xff] }
  0x13   : > { %919 = vmatprep.subr.bf16.mxu1 %v1040_v1  ;;  %v613_v21 = vld [vmem:[%s1266_s5 + $0x60] sm:$0xff]  ;;  %v611_v23 = vld [vmem:[%s1266_s5 + $0x50] sm:$0xff]  ;;  %v610_v24 = vld [vmem:[%s1266_s5 + $0x48] sm:$0xff] }
  0x14   : > { %898 = vmatpush3.bf16.msra.mxu0 %v1005_v6  ;;  %v609_v25 = vld [vmem:[%s1266_s5 + $0x40] sm:$0xff]  ;;  %v608_v26 = vld [vmem:[%s1266_s5 + $0x38] sm:$0xff]  ;;  %v607_v27 = vld [vmem:[%s1266_s5 + $0x30] sm:$0xff] }
  0x15   : > { %899 = vmatprep.subr.bf16.mxu0 %v1040_v1  ;;  %v606_v28 = vld [vmem:[%s1266_s5 + $0x28] sm:$0xff]  ;;  %v605_v29 = vld [vmem:[%s1266_s5 + $0x20] sm:$0xff]  ;;  %v604_v30 = vld [vmem:[%s1266_s5 + $0x18] sm:$0xff] }
  0x16   : > { %920 = vmatpush3.bf16.msra.mxu1 %v998_v3  ;;  %v603_v31 = vld [vmem:[%s1266_s5 + $0x10] sm:$0xff]  ;;  %v602_v32 = vld [vmem:[%s1266_s5 + $0x8] sm:$0xff]  ;;  %v601_v33 = vld [vmem:[%s1266_s5] sm:$0xff] }
  0x17   : > { %921 = vmatprep.subr.bf16.mxu1 %v1040_v1  ;;  %v848_v34 = vld [vmem:[%s1265_s4] ss:$0 sm:$0xff] }
  0x18   : > { %900 = vmatpush3.bf16.msra.mxu0 %v1006_v8  ;;  %v839_v48 = vld [vmem:[%s1263_s2] ss:$0 sm:$0xff] }
  0x19   : > { %901 = vmatprep.subr.bf16.mxu0 %v1040_v1 }
  0x1a   : > { %922 = vmatpush3.bf16.msra.mxu1 %v999_v5 }
  0x1b   : > { %923 = vmatprep.subr.bf16.mxu1 %v1040_v1 }
  0x1c   : > { %902 = vmatpush3.bf16.msra.mxu0 %v1007_v10 }
  0x1d   : > { %903 = vmatprep.subr.bf16.mxu0 %v1040_v1 }
  0x1e   : > { %924 = vmatpush3.bf16.msra.mxu1 %v1000_v7 }
  0x1f   : > { %925 = vmatprep.subr.bf16.mxu1 %v1040_v1 }
  0x20   : > { %904 = vmatpush3.bf16.msra.mxu0 %v1008_v12 }
  0x21   : > { %905 = vmatprep.subr.bf16.mxu0 %v1040_v1 }
  0x22   : > { %926 = vmatpush3.bf16.msra.mxu1 %v1001_v9 }
  0x23   : > { %927 = vmatprep.subr.bf16.mxu1 %v1040_v1 }
  0x24   : > { %906 = vmatpush3.bf16.msra.mxu0 %v1009_v14 }
  0x25   : > { %907 = vmatprep.subr.bf16.mxu0 %v1040_v1 }
  0x26   : > { %928 = vmatpush3.bf16.msra.mxu1 %v1002_v11 }
  0x27   : > { %929 = vmatprep.subr.bf16.mxu1 %v1040_v1 }
  0x28   : > { %908 = vmatpush3.bf16.msra.mxu0 %v1010_v16 }
  0x29   : > { %909 = vmatprep.subr.bf16.mxu0 %v1040_v1 }
  0x2a   : > { %930 = vmatpush3.bf16.msra.mxu1 %v1003_v13 }
  0x2c   : > { %910 = vmatpush3.bf16.msra.mxu0 %v1011_v17 }
  0x2d   : > { %932 = vmatmul.mubr.bf16.vlgmr.msra.gmra.mxu1 %v372_v15  ;;  %935 = vmatprep.subr.mxu0 %v1040_v1 }
  0x2f   : > { %912 = vmatmul.mubr.bf16.vlgmr.msra.gmra.mxu0 %v372_v15 }
  0x30   : > { %967 = vmatprep.mubr.msk.f32.mxu0 %vm1041_vm0, %v1040_v1  ;;  %936 = vmatpush3.msra.mxu0 %v616_v18 }
  0x31   : > { %937 = vmatprep.subr.mxu0 %v1040_v1 }
  0x32   : > { %938 = vmatpush3.msra.mxu0 %v615_v19 }
  0x33   : > { %939 = vmatprep.subr.mxu0 %v1040_v1 }
  0x34   : > { %940 = vmatpush3.msra.mxu0 %v614_v20 }
  0x35   : > { %941 = vmatprep.subr.mxu0 %v1040_v1 }
  0x36   : > { %942 = vmatpush3.msra.mxu0 %v613_v21 }
  0x37   : > { %943 = vmatprep.subr.mxu0 %v1040_v1 }
  0x38   : > { %944 = vmatpush3.msra.mxu0 %v612_v22 }
  0x39   : > { %945 = vmatprep.subr.mxu0 %v1040_v1 }
  0x3a   : > { %946 = vmatpush3.msra.mxu0 %v611_v23 }
  0x3b   : > { %947 = vmatprep.subr.mxu0 %v1040_v1 }
  0x3c   : > { %948 = vmatpush3.msra.mxu0 %v610_v24 }
  0x3d   : > { %949 = vmatprep.subr.mxu0 %v1040_v1 }
  0x3e   : > { %950 = vmatpush3.msra.mxu0 %v609_v25 }
  0x3f   : > { %951 = vmatprep.subr.mxu0 %v1040_v1 }
  0x40   : > { %952 = vmatpush3.msra.mxu0 %v608_v26 }
  0x41   : > { %953 = vmatprep.subr.mxu0 %v1040_v1 }
  0x42   : > { %954 = vmatpush3.msra.mxu0 %v607_v27 }
  0x43   : > { %955 = vmatprep.subr.mxu0 %v1040_v1 }
  0x44   : > { %956 = vmatpush3.msra.mxu0 %v606_v28 }
  0x45   : > { %957 = vmatprep.subr.mxu0 %v1040_v1 }
  0x46   : > { %958 = vmatpush3.msra.mxu0 %v605_v29 }
  0x47   : > { %959 = vmatprep.subr.mxu0 %v1040_v1 }
  0x48   : > { %960 = vmatpush3.msra.mxu0 %v604_v30 }
  0x49   : > { %961 = vmatprep.subr.mxu0 %v1040_v1 }
  0x4a   : > { %962 = vmatpush3.msra.mxu0 %v603_v31 }
  0x4b   : > { %963 = vmatprep.subr.mxu0 %v1040_v1 }
  0x4c   : > { %964 = vmatpush3.msra.mxu0 %v602_v32 }
  0x4d   : > { %965 = vmatprep.subr.mxu0 %v1040_v1 }
  0x4e   : > { %966 = vmatpush3.msra.mxu0 %v601_v33 }
  0xed   : > { %v589_v35 = vpop.f32.mrf.mxu1 }
  0xee   : > { %v590_v36 = vadd.f32 %v848_v34, %v589_v35 }
  0xef   : > { %v933_v37 = vpop.f32.mrf.mxu1  ;;  %v494_v41 = vpop.f32.mrf.mxu0 }
  0xf0   : > { %v857_v38 = vmul.f32 -1.442695, %v590_v36  ;;  %v495_v49 = vadd.f32 %v839_v48, %v494_v41 }
  0xf1   : > { %v592_v39 = vpop.f32.mrf.mxu1  ;;  %v913_v42 = vpop.f32.mrf.mxu0 }
  0xf2   : > { %1012 = vpow2.f32 %v857_v38 }
  0xf3   : > { %v934_v40 = vpop.f32.mrf.mxu1  ;;  %v497_v43 = vpop.f32.mrf.mxu0 }
  0xf5   : > { %v914_v44 = vpop.f32.mrf.mxu0 }
  0xff   : > { %v1013_v45 = vpop.eup %1012 }
 0x100   : > { %v598_v46 = vadd.f32 1.0, %v1013_v45 }
 0x102   : > { %1014 = vrcp.f32 %v598_v46 }
 0x10f   : > { %v1015_v47 = vpop.eup %1014 }
 0x110   : > { %968 = vmatmul.mubr.f32.vlgmr.msra.gmra.mxu0 %v1015_v47 }
 0x1d0   : > { %v683_v50 = vpop.f32.mrf.mxu0 }
 0x1d1   : > { %v687_v51 = vmul.f32 %v683_v50, %v495_v49 }
 0x1d2   : > { %v969_v52 = vpop.f32.mrf.mxu0 }
 0x1d3   : > { %v688_v53 = vpack.c.bf16 %v687_v51, %v687_v51 }
 0x1d5   : > { %689 = vst [vmem:[%s370_s17] sm:$0xf] %v688_v53 }
 0x1d6 PF: > { %s16_s23 = sadd.s32 1, %s1038_s23   ;;  %s1268_s21 = smov %s1034_s22 }
 0x1d7   : > { %p13_p5 = scmp.ge.s32.totalorder %s16_s23, 4   ;;  %s1269_s22 = smov %s1271_s24 }
 0x1d9   :  { %15 = sbr.rel (!%p13_p5) target bundleno = 2 (0x2), region = 86 }

</bundles_post_ra>
